<compile_context>
chip_gen: v6e
topology: v6e:2x2x1
jax: 0.10.0
libtpu: 0.0.40
codegen_flags: <defaults>
</compile_context>

<pallas_src>
import jax
import jax.numpy as jnp
import numpy as np
from jax import lax
from jax.experimental import pallas as pl
from jax.experimental.pallas import tpu as pltpu

STRIPE = 128  # one full lane group per gate (r | z | n)


def _make_kernel(chunk_t, t_total, needs_mask):
    def kernel(x_ref, wih_ref, whh_ref, bgx_ref, bhn_ref, wlin_ref, blin_ref,
               out_ref, gx_ref, h_ref):
        c = pl.program_id(0)

        @pl.when(c == 0)
        def _init():
            h_ref[...] = jnp.zeros_like(h_ref)

        # ---- input-to-hidden gate precompute for this chunk (off the serial
        # chain).  Rank-1 matmul on the otherwise-idle MXU lands the result
        # directly in (rows, 3*128) gate-striped lane layout.
        gx = jnp.dot(x_ref[...], wih_ref[...],
                     preferred_element_type=jnp.float32) + bgx_ref[...]
        gx_ref[...] = gx.reshape(gx_ref.shape)          # (chunk_t, B, 3*128)

        # Loop-invariant loads hoisted out of the recurrence.
        whh = whh_ref[...]   # (128, 3*128) bf16, rows >= H and off-stripe lanes are zero
        bhn = bhn_ref[...]   # (1, 128) f32, b_hn in lanes [0, H)

        def step(t, h):
            gx_t = gx_ref[t]                             # (B, 3*128) leading-axis read
            # hidden-to-hidden gates: bf16 MXU operands, f32 accumulate.
            gh = jnp.dot(h.astype(jnp.bfloat16), whh,
                         preferred_element_type=jnp.float32)        # (B, 3*128)
            # fused r|z sigmoid over the two leading 128-lane stripes; all gate
            # slices are whole-vreg picks (no per-step XLU relayout).
            rz = jax.nn.sigmoid(gx_t[:, :2 * STRIPE] + gh[:, :2 * STRIPE])
            r = rz[:, :STRIPE]
            z = rz[:, STRIPE:]
            # n = tanh(W_in x + b_in + r * (W_hn h + b_hn))   (PyTorch form)
            n = jnp.tanh(gx_t[:, 2 * STRIPE:] + r * (gh[:, 2 * STRIPE:] + bhn))
            h_new = (1.0 - z) * n + z * h
            if needs_mask:      # only emitted when T was padded to a chunk multiple
                valid = (c * chunk_t + t) < t_total
                h_new = jnp.where(valid, h_new, h)
            return h_new

        unroll = True if chunk_t <= 32 else 8
        h_ref[...] = lax.fori_loop(0, chunk_t, step, h_ref[...], unroll=unroll)

        @pl.when(c == pl.num_programs(0) - 1)
        def _finalize():
            # Linear(H, 1) epilogue as VPU multiply + lane reduction (avoids an
            # N=1 MXU fill/drain on the tail).
            hT = h_ref[...]
            out_ref[...] = (jnp.sum(hT * wlin_ref[...], axis=-1, keepdims=True)
                            + blin_ref[...])

    return kernel


@jax.jit
def gru_forecaster(x, params):
    """x: (B, T) float32 -> (B, 1) float32.  Matches GRUForecaster.forward."""
    B, T = x.shape
    H = params["w_hh"].shape[1]
    S = STRIPE
    assert B % 8 == 0, "batch must be a sublane multiple (pad externally)"
    assert H <= S, "hidden size must fit in one 128-lane stripe"

    w_ih, w_hh = params["w_ih"], params["w_hh"]        # (3H, 1), (3H, H)
    b_ih, b_hh = params["b_ih"], params["b_hh"]        # (3H,),  (3H,)

    # ---- gate-striped weight layout: gate g occupies lanes [128g, 128g+H);
    # everything outside the stripes is zero so padding lanes stay inert.
    wih_s = jnp.zeros((1, 3 * S), jnp.float32)
    whh_s = jnp.zeros((S, 3 * S), jnp.float32)
    bgx_s = jnp.zeros((1, 3 * S), jnp.float32)
    for g in range(3):
        wih_s = wih_s.at[0, g * S:g * S + H].set(w_ih[g * H:(g + 1) * H, 0])
        whh_s = whh_s.at[:H, g * S:g * S + H].set(w_hh[g * H:(g + 1) * H, :].T)
        bg = b_ih[g * H:(g + 1) * H]
        if g < 2:                       # fold b_hh into the r|z input-side bias
            bg = bg + b_hh[g * H:(g + 1) * H]
        bgx_s = bgx_s.at[0, g * S:g * S + H].set(bg)
    bhn_s = jnp.zeros((1, S), jnp.float32).at[0, :H].set(b_hh[2 * H:])  # stays in r*(...)
    wlin_s = jnp.zeros((1, S), jnp.float32).at[0, :H].set(params["w_lin"][0])
    blin = params["b_lin"].reshape(1, 1)
    whh_bf16 = whh_s.astype(jnp.bfloat16)   # MXU operand only; gate math stays f32

    # ---- chunk the time axis so the gx slab stays VMEM-bounded for long T.
    chunk_t = min(128, T)
    num_chunks = -(-T // chunk_t)
    t_pad = num_chunks * chunk_t

    xT = x.T                                            # (T, B), time-major
    if t_pad != T:
        xT = jnp.pad(xT, ((0, t_pad - T), (0, 0)))
    x_flat = xT.reshape(t_pad * B, 1)                   # rows = (t, b); K = 1

    kernel = _make_kernel(chunk_t, T, t_pad != T)

    def const_spec(shape):
        return pl.BlockSpec(shape, lambda c: (0,) * len(shape))

    grid_spec = pltpu.PrefetchScalarGridSpec(
        num_scalar_prefetch=0,
        grid=(num_chunks,),
        in_specs=[
            pl.BlockSpec((chunk_t * B, 1), lambda c: (c, 0)),  # x, streamed per chunk
            const_spec((1, 3 * S)),      # W_ih (striped)
            const_spec((S, 3 * S)),      # W_hh (striped, bf16)
            const_spec((1, 3 * S)),      # folded input-side bias
            const_spec((1, S)),          # b_hn
            const_spec((1, S)),          # linear weight
            const_spec((1, 1)),          # linear bias
        ],
        out_specs=pl.BlockSpec((B, 1), lambda c: (0, 0)),
        scratch_shapes=[
            pltpu.VMEM((chunk_t, B, 3 * S), jnp.float32),   # gx slab (per chunk)
            pltpu.VMEM((B, S), jnp.float32),                # hidden-state carry
        ],
    )

    return pl.pallas_call(
        kernel,
        out_shape=jax.ShapeDtypeStruct((B, 1), jnp.float32),
        grid_spec=grid_spec,
        compiler_params=pltpu.CompilerParams(
            dimension_semantics=("arbitrary",)),    # serial h carry across chunks
    )(x_flat, wih_s, whh_bf16, bgx_s, bhn_s, wlin_s, blin)


def init_params(key, hidden=32):
    """Deterministic init mimicking PyTorch's U(-1/sqrt(H), 1/sqrt(H)), torch layout."""
    H = hidden
    k = 1.0 / np.sqrt(H)
    ks = jax.random.split(key, 6)
    u = lambda kk, shape: jax.random.uniform(kk, shape, jnp.float32, -k, k)
    return {
        "w_ih": u(ks[0], (3 * H, 1)),      # torch weight_ih_l0
        "w_hh": u(ks[1], (3 * H, H)),      # torch weight_hh_l0
        "b_ih": u(ks[2], (3 * H,)),
        "b_hh": u(ks[3], (3 * H,)),
        "w_lin": u(ks[4], (1, H)),         # torch lin.weight
        "b_lin": u(ks[5], (1,)),           # torch lin.bias
    }


def gru_forecaster_ref(x, params):
    """Pure-JAX f32 reference matching torch.nn.GRU + Linear semantics."""
    H = params["w_hh"].shape[1]
    B, T = x.shape
    wih_t = params["w_ih"].T               # (1, 3H)
    whh_t = params["w_hh"].T               # (H, 3H)
    bih = params["b_ih"][None, :]
    bhh = params["b_hh"][None, :]

    def step(h, x_t):
        gx = x_t[:, None] * wih_t + bih
        gh = h @ whh_t + bhh
        r = jax.nn.sigmoid(gx[:, :H] + gh[:, :H])
        z = jax.nn.sigmoid(gx[:, H:2 * H] + gh[:, H:2 * H])
        n = jnp.tanh(gx[:, 2 * H:] + r * gh[:, 2 * H:])
        return (1.0 - z) * n + z * h, None

    h0 = jnp.zeros((B, H), jnp.float32)
    hT, _ = lax.scan(step, h0, x.T)
    return hT @ params["w_lin"].T + params["b_lin"][None, :]


if __name__ == "__main__":
    B, T, H = 8, 8, 32                       # B a sublane multiple
    key = jax.random.PRNGKey(0)
    kx, kp = jax.random.split(key)
    x = jax.random.normal(kx, (B, T), jnp.float32)
    params = init_params(kp, hidden=H)

    out = jax.block_until_ready(gru_forecaster(x, params))
    ref = gru_forecaster_ref(x, params)

    # Relaxed tolerance: the recurrent h @ W_hh uses bf16 MXU operands.
    np.testing.assert_allclose(np.asarray(out), np.asarray(ref),
                               rtol=2e-2, atol=2e-2)
    print("KERNEL_OK")
</pallas_src>

<mosaic_0001>
module attributes {stable_mosaic.version = 11 : i64} {
  func.func @kernel(%arg0: i32, %arg1: memref<64x1xf32, #tpu.memory_space<vmem>>, %arg2: memref<1x384xf32, #tpu.memory_space<vmem>>, %arg3: memref<128x384xbf16, #tpu.memory_space<vmem>>, %arg4: memref<1x384xf32, #tpu.memory_space<vmem>>, %arg5: memref<1x128xf32, #tpu.memory_space<vmem>>, %arg6: memref<1x128xf32, #tpu.memory_space<vmem>>, %arg7: memref<1x1xf32, #tpu.memory_space<vmem>>, %arg8: memref<8x1xf32, #tpu.memory_space<vmem>>, %arg9: memref<8x8x384xf32, #tpu.memory_space<vmem>>, %arg10: memref<8x128xf32, #tpu.memory_space<vmem>>) attributes {dimension_semantics = [#tpu.dimension_semantics<arbitrary>], iteration_bounds = array<i64: 1>, scalar_prefetch = 0 : i64, scratch_operands = 2 : i64, tpu.core_type = #tpu.core_type<tc>, window_params = [{transform_indices = @transform_0, window_bounds = array<i64: 64, 1>}, {pipeline_mode = #tpu.pipeline_mode<synchronous>, transform_indices = @transform_1, window_bounds = array<i64: 1, 384>}, {pipeline_mode = #tpu.pipeline_mode<synchronous>, transform_indices = @transform_2, window_bounds = array<i64: 128, 384>}, {pipeline_mode = #tpu.pipeline_mode<synchronous>, transform_indices = @transform_3, window_bounds = array<i64: 1, 384>}, {pipeline_mode = #tpu.pipeline_mode<synchronous>, transform_indices = @transform_4, window_bounds = array<i64: 1, 128>}, {pipeline_mode = #tpu.pipeline_mode<synchronous>, transform_indices = @transform_5, window_bounds = array<i64: 1, 128>}, {pipeline_mode = #tpu.pipeline_mode<synchronous>, transform_indices = @transform_6, window_bounds = array<i64: 1, 1>}, {pipeline_mode = #tpu.pipeline_mode<synchronous>, transform_indices = @transform_7, window_bounds = array<i64: 8, 1>}]} {
    %c0_i32 = arith.constant 0 : i32
    %0 = arith.cmpi eq, %arg0, %c0_i32 : i32
    %1 = arith.extui %0 : i1 to i32
    %c0_i32_0 = arith.constant 0 : i32
    %2 = arith.cmpi ne, %1, %c0_i32_0 : i32
    scf.if %2 {
      %cst_60 = arith.constant 0.000000e+00 : f32
      %234 = vector.broadcast %cst_60 : f32 to vector<8x128xf32>
      %c0_61 = arith.constant 0 : index
      %c0_62 = arith.constant 0 : index
      %235 = vector.load %arg10[%c0_61, %c0_62] : memref<8x128xf32, #tpu.memory_space<vmem>>, vector<8x128xf32>
      tpu.vector_store %arg10[%c0_61, %c0_62], %234 {strides = array<i32>} : memref<8x128xf32, #tpu.memory_space<vmem>>, vector<8x128xf32>,
    } else {
    }
    %c0 = arith.constant 0 : index
    %c0_1 = arith.constant 0 : index
    %3 = vector.load %arg1[%c0, %c0_1] : memref<64x1xf32, #tpu.memory_space<vmem>>, vector<64x1xf32>
    %c0_2 = arith.constant 0 : index
    %c0_3 = arith.constant 0 : index
    %4 = vector.load %arg2[%c0_2, %c0_3] : memref<1x384xf32, #tpu.memory_space<vmem>>, vector<1x384xf32>
    %cst = arith.constant dense<0.000000e+00> : vector<64x384xf32>
    %5 = tpu.matmul %3, %4, %cst {dimension_numbers = #tpu.dot_dimension_numbers<[1], [0], [0], [1], [0, 0, 1, 1], [], []>} : vector<64x1xf32>, vector<1x384xf32>, vector<64x384xf32> -> vector<64x384xf32>
    %c0_4 = arith.constant 0 : index
    %c0_5 = arith.constant 0 : index
    %6 = vector.load %arg4[%c0_4, %c0_5] : memref<1x384xf32, #tpu.memory_space<vmem>>, vector<1x384xf32>
    %7 = vector.broadcast %6 : vector<1x384xf32> to vector<64x384xf32>
    %8 = arith.addf %5, %7 : vector<64x384xf32>
    %9 = vector.shape_cast %8 : vector<64x384xf32> to vector<8x8x384xf32>
    %c0_6 = arith.constant 0 : index
    %c0_7 = arith.constant 0 : index
    %c0_8 = arith.constant 0 : index
    %10 = vector.load %arg9[%c0_6, %c0_7, %c0_8] : memref<8x8x384xf32, #tpu.memory_space<vmem>>, vector<8x8x384xf32>
    tpu.vector_store %arg9[%c0_6, %c0_7, %c0_8], %9 {strides = array<i32>} : memref<8x8x384xf32, #tpu.memory_space<vmem>>, vector<8x8x384xf32>,
    %c0_9 = arith.constant 0 : index
    %c0_10 = arith.constant 0 : index
    %11 = vector.load %arg3[%c0_9, %c0_10] : memref<128x384xbf16, #tpu.memory_space<vmem>>, vector<128x384xbf16>
    %c0_11 = arith.constant 0 : index
    %c0_12 = arith.constant 0 : index
    %12 = vector.load %arg5[%c0_11, %c0_12] : memref<1x128xf32, #tpu.memory_space<vmem>>, vector<1x128xf32>
    %c0_13 = arith.constant 0 : index
    %c0_14 = arith.constant 0 : index
    %13 = vector.load %arg10[%c0_13, %c0_14] : memref<8x128xf32, #tpu.memory_space<vmem>>, vector<8x128xf32>
    %c0_i32_15 = arith.constant 0 : i32
    %14 = arith.index_cast %c0_i32_15 : i32 to index
    %c0_16 = arith.constant 0 : index
    %c0_17 = arith.constant 0 : index
    %15 = vector.load %arg9[%14, %c0_16, %c0_17] : memref<8x8x384xf32, #tpu.memory_space<vmem>>, vector<1x8x384xf32>
    %16 = vector.shape_cast %15 : vector<1x8x384xf32> to vector<8x384xf32>
    %17 = arith.truncf %13 : vector<8x128xf32> to vector<8x128xbf16>
    %cst_18 = arith.constant dense<0.000000e+00> : vector<8x384xf32>
    %18 = tpu.matmul %17, %11, %cst_18 {dimension_numbers = #tpu.dot_dimension_numbers<[1], [0], [0], [1], [0, 0, 1, 1], [], []>} : vector<8x128xbf16>, vector<128x384xbf16>, vector<8x384xf32> -> vector<8x384xf32>
    %19 = vector.extract_strided_slice %16 {offsets = [0, 0], sizes = [8, 256], strides = [1, 1]} : vector<8x384xf32> to vector<8x256xf32>
    %20 = vector.extract_strided_slice %18 {offsets = [0, 0], sizes = [8, 256], strides = [1, 1]} : vector<8x384xf32> to vector<8x256xf32>
    %21 = arith.addf %19, %20 : vector<8x256xf32>
    %22 = arith.negf %21 : vector<8x256xf32>
    %23 = math.exp %22 : vector<8x256xf32>
    %cst_19 = arith.constant 1.000000e+00 : f32
    %24 = vector.broadcast %cst_19 : f32 to vector<8x256xf32>
    %25 = arith.addf %24, %23 : vector<8x256xf32>
    %26 = arith.divf %24, %25 : vector<8x256xf32>
    %27 = vector.extract_strided_slice %26 {offsets = [0, 0], sizes = [8, 128], strides = [1, 1]} : vector<8x256xf32> to vector<8x128xf32>
    %28 = vector.extract_strided_slice %26 {offsets = [0, 128], sizes = [8, 128], strides = [1, 1]} : vector<8x256xf32> to vector<8x128xf32>
    %29 = vector.extract_strided_slice %16 {offsets = [0, 256], sizes = [8, 128], strides = [1, 1]} : vector<8x384xf32> to vector<8x128xf32>
    %30 = vector.extract_strided_slice %18 {offsets = [0, 256], sizes = [8, 128], strides = [1, 1]} : vector<8x384xf32> to vector<8x128xf32>
    %31 = vector.broadcast %12 : vector<1x128xf32> to vector<8x128xf32>
    %32 = arith.addf %30, %31 : vector<8x128xf32>
    %33 = arith.mulf %27, %32 : vector<8x128xf32>
    %34 = arith.addf %29, %33 : vector<8x128xf32>
    %35 = math.tanh %34 : vector<8x128xf32>
    %cst_20 = arith.constant 1.000000e+00 : f32
    %36 = vector.broadcast %cst_20 : f32 to vector<8x128xf32>
    %37 = arith.subf %36, %28 : vector<8x128xf32>
    %38 = arith.mulf %37, %35 : vector<8x128xf32>
    %39 = arith.mulf %28, %13 : vector<8x128xf32>
    %40 = arith.addf %38, %39 : vector<8x128xf32>
    %c1_i32 = arith.constant 1 : i32
    %41 = arith.index_cast %c1_i32 : i32 to index
    %c0_21 = arith.constant 0 : index
    %c0_22 = arith.constant 0 : index
    %42 = vector.load %arg9[%41, %c0_21, %c0_22] : memref<8x8x384xf32, #tpu.memory_space<vmem>>, vector<1x8x384xf32>
    %43 = vector.shape_cast %42 : vector<1x8x384xf32> to vector<8x384xf32>
    %44 = arith.truncf %40 : vector<8x128xf32> to vector<8x128xbf16>
    %cst_23 = arith.constant dense<0.000000e+00> : vector<8x384xf32>
    %45 = tpu.matmul %44, %11, %cst_23 {dimension_numbers = #tpu.dot_dimension_numbers<[1], [0], [0], [1], [0, 0, 1, 1], [], []>} : vector<8x128xbf16>, vector<128x384xbf16>, vector<8x384xf32> -> vector<8x384xf32>
    %46 = vector.extract_strided_slice %43 {offsets = [0, 0], sizes = [8, 256], strides = [1, 1]} : vector<8x384xf32> to vector<8x256xf32>
    %47 = vector.extract_strided_slice %45 {offsets = [0, 0], sizes = [8, 256], strides = [1, 1]} : vector<8x384xf32> to vector<8x256xf32>
    %48 = arith.addf %46, %47 : vector<8x256xf32>
    %49 = arith.negf %48 : vector<8x256xf32>
    %50 = math.exp %49 : vector<8x256xf32>
    %cst_24 = arith.constant 1.000000e+00 : f32
    %51 = vector.broadcast %cst_24 : f32 to vector<8x256xf32>
    %52 = arith.addf %51, %50 : vector<8x256xf32>
    %53 = arith.divf %51, %52 : vector<8x256xf32>
    %54 = vector.extract_strided_slice %53 {offsets = [0, 0], sizes = [8, 128], strides = [1, 1]} : vector<8x256xf32> to vector<8x128xf32>
    %55 = vector.extract_strided_slice %53 {offsets = [0, 128], sizes = [8, 128], strides = [1, 1]} : vector<8x256xf32> to vector<8x128xf32>
    %56 = vector.extract_strided_slice %43 {offsets = [0, 256], sizes = [8, 128], strides = [1, 1]} : vector<8x384xf32> to vector<8x128xf32>
    %57 = vector.extract_strided_slice %45 {offsets = [0, 256], sizes = [8, 128], strides = [1, 1]} : vector<8x384xf32> to vector<8x128xf32>
    %58 = vector.broadcast %12 : vector<1x128xf32> to vector<8x128xf32>
    %59 = arith.addf %57, %58 : vector<8x128xf32>
    %60 = arith.mulf %54, %59 : vector<8x128xf32>
    %61 = arith.addf %56, %60 : vector<8x128xf32>
    %62 = math.tanh %61 : vector<8x128xf32>
    %cst_25 = arith.constant 1.000000e+00 : f32
    %63 = vector.broadcast %cst_25 : f32 to vector<8x128xf32>
    %64 = arith.subf %63, %55 : vector<8x128xf32>
    %65 = arith.mulf %64, %62 : vector<8x128xf32>
    %66 = arith.mulf %55, %40 : vector<8x128xf32>
    %67 = arith.addf %65, %66 : vector<8x128xf32>
    %c2_i32 = arith.constant 2 : i32
    %68 = arith.index_cast %c2_i32 : i32 to index
    %c0_26 = arith.constant 0 : index
    %c0_27 = arith.constant 0 : index
    %69 = vector.load %arg9[%68, %c0_26, %c0_27] : memref<8x8x384xf32, #tpu.memory_space<vmem>>, vector<1x8x384xf32>
    %70 = vector.shape_cast %69 : vector<1x8x384xf32> to vector<8x384xf32>
    %71 = arith.truncf %67 : vector<8x128xf32> to vector<8x128xbf16>
    %cst_28 = arith.constant dense<0.000000e+00> : vector<8x384xf32>
    %72 = tpu.matmul %71, %11, %cst_28 {dimension_numbers = #tpu.dot_dimension_numbers<[1], [0], [0], [1], [0, 0, 1, 1], [], []>} : vector<8x128xbf16>, vector<128x384xbf16>, vector<8x384xf32> -> vector<8x384xf32>
    %73 = vector.extract_strided_slice %70 {offsets = [0, 0], sizes = [8, 256], strides = [1, 1]} : vector<8x384xf32> to vector<8x256xf32>
    %74 = vector.extract_strided_slice %72 {offsets = [0, 0], sizes = [8, 256], strides = [1, 1]} : vector<8x384xf32> to vector<8x256xf32>
    %75 = arith.addf %73, %74 : vector<8x256xf32>
    %76 = arith.negf %75 : vector<8x256xf32>
    %77 = math.exp %76 : vector<8x256xf32>
    %cst_29 = arith.constant 1.000000e+00 : f32
    %78 = vector.broadcast %cst_29 : f32 to vector<8x256xf32>
    %79 = arith.addf %78, %77 : vector<8x256xf32>
    %80 = arith.divf %78, %79 : vector<8x256xf32>
    %81 = vector.extract_strided_slice %80 {offsets = [0, 0], sizes = [8, 128], strides = [1, 1]} : vector<8x256xf32> to vector<8x128xf32>
    %82 = vector.extract_strided_slice %80 {offsets = [0, 128], sizes = [8, 128], strides = [1, 1]} : vector<8x256xf32> to vector<8x128xf32>
    %83 = vector.extract_strided_slice %70 {offsets = [0, 256], sizes = [8, 128], strides = [1, 1]} : vector<8x384xf32> to vector<8x128xf32>
    %84 = vector.extract_strided_slice %72 {offsets = [0, 256], sizes = [8, 128], strides = [1, 1]} : vector<8x384xf32> to vector<8x128xf32>
    %85 = vector.broadcast %12 : vector<1x128xf32> to vector<8x128xf32>
    %86 = arith.addf %84, %85 : vector<8x128xf32>
    %87 = arith.mulf %81, %86 : vector<8x128xf32>
    %88 = arith.addf %83, %87 : vector<8x128xf32>
    %89 = math.tanh %88 : vector<8x128xf32>
    %cst_30 = arith.constant 1.000000e+00 : f32
    %90 = vector.broadcast %cst_30 : f32 to vector<8x128xf32>
    %91 = arith.subf %90, %82 : vector<8x128xf32>
    %92 = arith.mulf %91, %89 : vector<8x128xf32>
    %93 = arith.mulf %82, %67 : vector<8x128xf32>
    %94 = arith.addf %92, %93 : vector<8x128xf32>
    %c3_i32 = arith.constant 3 : i32
    %95 = arith.index_cast %c3_i32 : i32 to index
    %c0_31 = arith.constant 0 : index
    %c0_32 = arith.constant 0 : index
    %96 = vector.load %arg9[%95, %c0_31, %c0_32] : memref<8x8x384xf32, #tpu.memory_space<vmem>>, vector<1x8x384xf32>
    %97 = vector.shape_cast %96 : vector<1x8x384xf32> to vector<8x384xf32>
    %98 = arith.truncf %94 : vector<8x128xf32> to vector<8x128xbf16>
    %cst_33 = arith.constant dense<0.000000e+00> : vector<8x384xf32>
    %99 = tpu.matmul %98, %11, %cst_33 {dimension_numbers = #tpu.dot_dimension_numbers<[1], [0], [0], [1], [0, 0, 1, 1], [], []>} : vector<8x128xbf16>, vector<128x384xbf16>, vector<8x384xf32> -> vector<8x384xf32>
    %100 = vector.extract_strided_slice %97 {offsets = [0, 0], sizes = [8, 256], strides = [1, 1]} : vector<8x384xf32> to vector<8x256xf32>
    %101 = vector.extract_strided_slice %99 {offsets = [0, 0], sizes = [8, 256], strides = [1, 1]} : vector<8x384xf32> to vector<8x256xf32>
    %102 = arith.addf %100, %101 : vector<8x256xf32>
    %103 = arith.negf %102 : vector<8x256xf32>
    %104 = math.exp %103 : vector<8x256xf32>
    %cst_34 = arith.constant 1.000000e+00 : f32
    %105 = vector.broadcast %cst_34 : f32 to vector<8x256xf32>
    %106 = arith.addf %105, %104 : vector<8x256xf32>
    %107 = arith.divf %105, %106 : vector<8x256xf32>
    %108 = vector.extract_strided_slice %107 {offsets = [0, 0], sizes = [8, 128], strides = [1, 1]} : vector<8x256xf32> to vector<8x128xf32>
    %109 = vector.extract_strided_slice %107 {offsets = [0, 128], sizes = [8, 128], strides = [1, 1]} : vector<8x256xf32> to vector<8x128xf32>
    %110 = vector.extract_strided_slice %97 {offsets = [0, 256], sizes = [8, 128], strides = [1, 1]} : vector<8x384xf32> to vector<8x128xf32>
    %111 = vector.extract_strided_slice %99 {offsets = [0, 256], sizes = [8, 128], strides = [1, 1]} : vector<8x384xf32> to vector<8x128xf32>
    %112 = vector.broadcast %12 : vector<1x128xf32> to vector<8x128xf32>
    %113 = arith.addf %111, %112 : vector<8x128xf32>
    %114 = arith.mulf %108, %113 : vector<8x128xf32>
    %115 = arith.addf %110, %114 : vector<8x128xf32>
    %116 = math.tanh %115 : vector<8x128xf32>
    %cst_35 = arith.constant 1.000000e+00 : f32
    %117 = vector.broadcast %cst_35 : f32 to vector<8x128xf32>
    %118 = arith.subf %117, %109 : vector<8x128xf32>
    %119 = arith.mulf %118, %116 : vector<8x128xf32>
    %120 = arith.mulf %109, %94 : vector<8x128xf32>
    %121 = arith.addf %119, %120 : vector<8x128xf32>
    %c4_i32 = arith.constant 4 : i32
    %122 = arith.index_cast %c4_i32 : i32 to index
    %c0_36 = arith.constant 0 : index
    %c0_37 = arith.constant 0 : index
    %123 = vector.load %arg9[%122, %c0_36, %c0_37] : memref<8x8x384xf32, #tpu.memory_space<vmem>>, vector<1x8x384xf32>
    %124 = vector.shape_cast %123 : vector<1x8x384xf32> to vector<8x384xf32>
    %125 = arith.truncf %121 : vector<8x128xf32> to vector<8x128xbf16>
    %cst_38 = arith.constant dense<0.000000e+00> : vector<8x384xf32>
    %126 = tpu.matmul %125, %11, %cst_38 {dimension_numbers = #tpu.dot_dimension_numbers<[1], [0], [0], [1], [0, 0, 1, 1], [], []>} : vector<8x128xbf16>, vector<128x384xbf16>, vector<8x384xf32> -> vector<8x384xf32>
    %127 = vector.extract_strided_slice %124 {offsets = [0, 0], sizes = [8, 256], strides = [1, 1]} : vector<8x384xf32> to vector<8x256xf32>
    %128 = vector.extract_strided_slice %126 {offsets = [0, 0], sizes = [8, 256], strides = [1, 1]} : vector<8x384xf32> to vector<8x256xf32>
    %129 = arith.addf %127, %128 : vector<8x256xf32>
    %130 = arith.negf %129 : vector<8x256xf32>
    %131 = math.exp %130 : vector<8x256xf32>
    %cst_39 = arith.constant 1.000000e+00 : f32
    %132 = vector.broadcast %cst_39 : f32 to vector<8x256xf32>
    %133 = arith.addf %132, %131 : vector<8x256xf32>
    %134 = arith.divf %132, %133 : vector<8x256xf32>
    %135 = vector.extract_strided_slice %134 {offsets = [0, 0], sizes = [8, 128], strides = [1, 1]} : vector<8x256xf32> to vector<8x128xf32>
    %136 = vector.extract_strided_slice %134 {offsets = [0, 128], sizes = [8, 128], strides = [1, 1]} : vector<8x256xf32> to vector<8x128xf32>
    %137 = vector.extract_strided_slice %124 {offsets = [0, 256], sizes = [8, 128], strides = [1, 1]} : vector<8x384xf32> to vector<8x128xf32>
    %138 = vector.extract_strided_slice %126 {offsets = [0, 256], sizes = [8, 128], strides = [1, 1]} : vector<8x384xf32> to vector<8x128xf32>
    %139 = vector.broadcast %12 : vector<1x128xf32> to vector<8x128xf32>
    %140 = arith.addf %138, %139 : vector<8x128xf32>
    %141 = arith.mulf %135, %140 : vector<8x128xf32>
    %142 = arith.addf %137, %141 : vector<8x128xf32>
    %143 = math.tanh %142 : vector<8x128xf32>
    %cst_40 = arith.constant 1.000000e+00 : f32
    %144 = vector.broadcast %cst_40 : f32 to vector<8x128xf32>
    %145 = arith.subf %144, %136 : vector<8x128xf32>
    %146 = arith.mulf %145, %143 : vector<8x128xf32>
    %147 = arith.mulf %136, %121 : vector<8x128xf32>
    %148 = arith.addf %146, %147 : vector<8x128xf32>
    %c5_i32 = arith.constant 5 : i32
    %149 = arith.index_cast %c5_i32 : i32 to index
    %c0_41 = arith.constant 0 : index
    %c0_42 = arith.constant 0 : index
    %150 = vector.load %arg9[%149, %c0_41, %c0_42] : memref<8x8x384xf32, #tpu.memory_space<vmem>>, vector<1x8x384xf32>
    %151 = vector.shape_cast %150 : vector<1x8x384xf32> to vector<8x384xf32>
    %152 = arith.truncf %148 : vector<8x128xf32> to vector<8x128xbf16>
    %cst_43 = arith.constant dense<0.000000e+00> : vector<8x384xf32>
    %153 = tpu.matmul %152, %11, %cst_43 {dimension_numbers = #tpu.dot_dimension_numbers<[1], [0], [0], [1], [0, 0, 1, 1], [], []>} : vector<8x128xbf16>, vector<128x384xbf16>, vector<8x384xf32> -> vector<8x384xf32>
    %154 = vector.extract_strided_slice %151 {offsets = [0, 0], sizes = [8, 256], strides = [1, 1]} : vector<8x384xf32> to vector<8x256xf32>
    %155 = vector.extract_strided_slice %153 {offsets = [0, 0], sizes = [8, 256], strides = [1, 1]} : vector<8x384xf32> to vector<8x256xf32>
    %156 = arith.addf %154, %155 : vector<8x256xf32>
    %157 = arith.negf %156 : vector<8x256xf32>
    %158 = math.exp %157 : vector<8x256xf32>
    %cst_44 = arith.constant 1.000000e+00 : f32
    %159 = vector.broadcast %cst_44 : f32 to vector<8x256xf32>
    %160 = arith.addf %159, %158 : vector<8x256xf32>
    %161 = arith.divf %159, %160 : vector<8x256xf32>
    %162 = vector.extract_strided_slice %161 {offsets = [0, 0], sizes = [8, 128], strides = [1, 1]} : vector<8x256xf32> to vector<8x128xf32>
    %163 = vector.extract_strided_slice %161 {offsets = [0, 128], sizes = [8, 128], strides = [1, 1]} : vector<8x256xf32> to vector<8x128xf32>
    %164 = vector.extract_strided_slice %151 {offsets = [0, 256], sizes = [8, 128], strides = [1, 1]} : vector<8x384xf32> to vector<8x128xf32>
    %165 = vector.extract_strided_slice %153 {offsets = [0, 256], sizes = [8, 128], strides = [1, 1]} : vector<8x384xf32> to vector<8x128xf32>
    %166 = vector.broadcast %12 : vector<1x128xf32> to vector<8x128xf32>
    %167 = arith.addf %165, %166 : vector<8x128xf32>
    %168 = arith.mulf %162, %167 : vector<8x128xf32>
    %169 = arith.addf %164, %168 : vector<8x128xf32>
    %170 = math.tanh %169 : vector<8x128xf32>
    %cst_45 = arith.constant 1.000000e+00 : f32
    %171 = vector.broadcast %cst_45 : f32 to vector<8x128xf32>
    %172 = arith.subf %171, %163 : vector<8x128xf32>
    %173 = arith.mulf %172, %170 : vector<8x128xf32>
    %174 = arith.mulf %163, %148 : vector<8x128xf32>
    %175 = arith.addf %173, %174 : vector<8x128xf32>
    %c6_i32 = arith.constant 6 : i32
    %176 = arith.index_cast %c6_i32 : i32 to index
    %c0_46 = arith.constant 0 : index
    %c0_47 = arith.constant 0 : index
    %177 = vector.load %arg9[%176, %c0_46, %c0_47] : memref<8x8x384xf32, #tpu.memory_space<vmem>>, vector<1x8x384xf32>
    %178 = vector.shape_cast %177 : vector<1x8x384xf32> to vector<8x384xf32>
    %179 = arith.truncf %175 : vector<8x128xf32> to vector<8x128xbf16>
    %cst_48 = arith.constant dense<0.000000e+00> : vector<8x384xf32>
    %180 = tpu.matmul %179, %11, %cst_48 {dimension_numbers = #tpu.dot_dimension_numbers<[1], [0], [0], [1], [0, 0, 1, 1], [], []>} : vector<8x128xbf16>, vector<128x384xbf16>, vector<8x384xf32> -> vector<8x384xf32>
    %181 = vector.extract_strided_slice %178 {offsets = [0, 0], sizes = [8, 256], strides = [1, 1]} : vector<8x384xf32> to vector<8x256xf32>
    %182 = vector.extract_strided_slice %180 {offsets = [0, 0], sizes = [8, 256], strides = [1, 1]} : vector<8x384xf32> to vector<8x256xf32>
    %183 = arith.addf %181, %182 : vector<8x256xf32>
    %184 = arith.negf %183 : vector<8x256xf32>
    %185 = math.exp %184 : vector<8x256xf32>
    %cst_49 = arith.constant 1.000000e+00 : f32
    %186 = vector.broadcast %cst_49 : f32 to vector<8x256xf32>
    %187 = arith.addf %186, %185 : vector<8x256xf32>
    %188 = arith.divf %186, %187 : vector<8x256xf32>
    %189 = vector.extract_strided_slice %188 {offsets = [0, 0], sizes = [8, 128], strides = [1, 1]} : vector<8x256xf32> to vector<8x128xf32>
    %190 = vector.extract_strided_slice %188 {offsets = [0, 128], sizes = [8, 128], strides = [1, 1]} : vector<8x256xf32> to vector<8x128xf32>
    %191 = vector.extract_strided_slice %178 {offsets = [0, 256], sizes = [8, 128], strides = [1, 1]} : vector<8x384xf32> to vector<8x128xf32>
    %192 = vector.extract_strided_slice %180 {offsets = [0, 256], sizes = [8, 128], strides = [1, 1]} : vector<8x384xf32> to vector<8x128xf32>
    %193 = vector.broadcast %12 : vector<1x128xf32> to vector<8x128xf32>
    %194 = arith.addf %192, %193 : vector<8x128xf32>
    %195 = arith.mulf %189, %194 : vector<8x128xf32>
    %196 = arith.addf %191, %195 : vector<8x128xf32>
    %197 = math.tanh %196 : vector<8x128xf32>
    %cst_50 = arith.constant 1.000000e+00 : f32
    %198 = vector.broadcast %cst_50 : f32 to vector<8x128xf32>
    %199 = arith.subf %198, %190 : vector<8x128xf32>
    %200 = arith.mulf %199, %197 : vector<8x128xf32>
    %201 = arith.mulf %190, %175 : vector<8x128xf32>
    %202 = arith.addf %200, %201 : vector<8x128xf32>
    %c7_i32 = arith.constant 7 : i32
    %203 = arith.index_cast %c7_i32 : i32 to index
    %c0_51 = arith.constant 0 : index
    %c0_52 = arith.constant 0 : index
    %204 = vector.load %arg9[%203, %c0_51, %c0_52] : memref<8x8x384xf32, #tpu.memory_space<vmem>>, vector<1x8x384xf32>
    %205 = vector.shape_cast %204 : vector<1x8x384xf32> to vector<8x384xf32>
    %206 = arith.truncf %202 : vector<8x128xf32> to vector<8x128xbf16>
    %cst_53 = arith.constant dense<0.000000e+00> : vector<8x384xf32>
    %207 = tpu.matmul %206, %11, %cst_53 {dimension_numbers = #tpu.dot_dimension_numbers<[1], [0], [0], [1], [0, 0, 1, 1], [], []>} : vector<8x128xbf16>, vector<128x384xbf16>, vector<8x384xf32> -> vector<8x384xf32>
    %208 = vector.extract_strided_slice %205 {offsets = [0, 0], sizes = [8, 256], strides = [1, 1]} : vector<8x384xf32> to vector<8x256xf32>
    %209 = vector.extract_strided_slice %207 {offsets = [0, 0], sizes = [8, 256], strides = [1, 1]} : vector<8x384xf32> to vector<8x256xf32>
    %210 = arith.addf %208, %209 : vector<8x256xf32>
    %211 = arith.negf %210 : vector<8x256xf32>
    %212 = math.exp %211 : vector<8x256xf32>
    %cst_54 = arith.constant 1.000000e+00 : f32
    %213 = vector.broadcast %cst_54 : f32 to vector<8x256xf32>
    %214 = arith.addf %213, %212 : vector<8x256xf32>
    %215 = arith.divf %213, %214 : vector<8x256xf32>
    %216 = vector.extract_strided_slice %215 {offsets = [0, 0], sizes = [8, 128], strides = [1, 1]} : vector<8x256xf32> to vector<8x128xf32>
    %217 = vector.extract_strided_slice %215 {offsets = [0, 128], sizes = [8, 128], strides = [1, 1]} : vector<8x256xf32> to vector<8x128xf32>
    %218 = vector.extract_strided_slice %205 {offsets = [0, 256], sizes = [8, 128], strides = [1, 1]} : vector<8x384xf32> to vector<8x128xf32>
    %219 = vector.extract_strided_slice %207 {offsets = [0, 256], sizes = [8, 128], strides = [1, 1]} : vector<8x384xf32> to vector<8x128xf32>
    %220 = vector.broadcast %12 : vector<1x128xf32> to vector<8x128xf32>
    %221 = arith.addf %219, %220 : vector<8x128xf32>
    %222 = arith.mulf %216, %221 : vector<8x128xf32>
    %223 = arith.addf %218, %222 : vector<8x128xf32>
    %224 = math.tanh %223 : vector<8x128xf32>
    %cst_55 = arith.constant 1.000000e+00 : f32
    %225 = vector.broadcast %cst_55 : f32 to vector<8x128xf32>
    %226 = arith.subf %225, %217 : vector<8x128xf32>
    %227 = arith.mulf %226, %224 : vector<8x128xf32>
    %228 = arith.mulf %217, %202 : vector<8x128xf32>
    %229 = arith.addf %227, %228 : vector<8x128xf32>
    %c8_i32 = arith.constant 8 : i32
    %c0_56 = arith.constant 0 : index
    %c0_57 = arith.constant 0 : index
    %230 = vector.load %arg10[%c0_56, %c0_57] : memref<8x128xf32, #tpu.memory_space<vmem>>, vector<8x128xf32>
    tpu.vector_store %arg10[%c0_56, %c0_57], %229 {strides = array<i32>} : memref<8x128xf32, #tpu.memory_space<vmem>>, vector<8x128xf32>,
    %c0_i32_58 = arith.constant 0 : i32
    %231 = arith.cmpi eq, %arg0, %c0_i32_58 : i32
    %232 = arith.extui %231 : i1 to i32
    %c0_i32_59 = arith.constant 0 : i32
    %233 = arith.cmpi ne, %232, %c0_i32_59 : i32
    scf.if %233 {
      %c0_60 = arith.constant 0 : index
      %c0_61 = arith.constant 0 : index
      %234 = vector.load %arg10[%c0_60, %c0_61] : memref<8x128xf32, #tpu.memory_space<vmem>>, vector<8x128xf32>
      %c0_62 = arith.constant 0 : index
      %c0_63 = arith.constant 0 : index
      %235 = vector.load %arg6[%c0_62, %c0_63] : memref<1x128xf32, #tpu.memory_space<vmem>>, vector<1x128xf32>
      %236 = vector.broadcast %235 : vector<1x128xf32> to vector<8x128xf32>
      %237 = arith.mulf %234, %236 : vector<8x128xf32>
      %cst_64 = arith.constant dense<0.000000e+00> : vector<8xf32>
      %238 = vector.multi_reduction <add>, %237, %cst_64 [1] : vector<8x128xf32> to vector<8xf32>
      %239 = vector.shape_cast %238 : vector<8xf32> to vector<8x1xf32>
      %c0_65 = arith.constant 0 : index
      %c0_66 = arith.constant 0 : index
      %240 = vector.load %arg7[%c0_65, %c0_66] : memref<1x1xf32, #tpu.memory_space<vmem>>, vector<1x1xf32>
      %241 = vector.broadcast %240 : vector<1x1xf32> to vector<8x1xf32>
      %242 = arith.addf %239, %241 : vector<8x1xf32>
      %c0_67 = arith.constant 0 : index
      %c0_68 = arith.constant 0 : index
      %243 = vector.load %arg8[%c0_67, %c0_68] : memref<8x1xf32, #tpu.memory_space<vmem>>, vector<8x1xf32>
      tpu.vector_store %arg8[%c0_67, %c0_68], %242 {strides = array<i32>} : memref<8x1xf32, #tpu.memory_space<vmem>>, vector<8x1xf32>,
    } else {
    }
    return
  }
  func.func @transform_0(%arg0: i32) -> (i32, i32) {
    %c0_i32 = arith.constant 0 : i32
    %c0_i32_0 = arith.constant 0 : i32
    return %arg0, %c0_i32 : i32, i32
  }
  func.func @transform_1(%arg0: i32) -> (i32, i32) {
    %c0_i32 = arith.constant 0 : i32
    %c0_i32_0 = arith.constant 0 : i32
    %c0_i32_1 = arith.constant 0 : i32
    return %c0_i32, %c0_i32_0 : i32, i32
  }
  func.func @transform_2(%arg0: i32) -> (i32, i32) {
    %c0_i32 = arith.constant 0 : i32
    %c0_i32_0 = arith.constant 0 : i32
    %c0_i32_1 = arith.constant 0 : i32
    return %c0_i32, %c0_i32_0 : i32, i32
  }
  func.func @transform_3(%arg0: i32) -> (i32, i32) {
    %c0_i32 = arith.constant 0 : i32
    %c0_i32_0 = arith.constant 0 : i32
    %c0_i32_1 = arith.constant 0 : i32
    return %c0_i32, %c0_i32_0 : i32, i32
  }
  func.func @transform_4(%arg0: i32) -> (i32, i32) {
    %c0_i32 = arith.constant 0 : i32
    %c0_i32_0 = arith.constant 0 : i32
    %c0_i32_1 = arith.constant 0 : i32
    return %c0_i32, %c0_i32_0 : i32, i32
  }
  func.func @transform_5(%arg0: i32) -> (i32, i32) {
    %c0_i32 = arith.constant 0 : i32
    %c0_i32_0 = arith.constant 0 : i32
    %c0_i32_1 = arith.constant 0 : i32
    return %c0_i32, %c0_i32_0 : i32, i32
  }
  func.func @transform_6(%arg0: i32) -> (i32, i32) {
    %c0_i32 = arith.constant 0 : i32
    %c0_i32_0 = arith.constant 0 : i32
    %c0_i32_1 = arith.constant 0 : i32
    return %c0_i32, %c0_i32_0 : i32, i32
  }
  func.func @transform_7(%arg0: i32) -> (i32, i32) {
    %c0_i32 = arith.constant 0 : i32
    %c0_i32_0 = arith.constant 0 : i32
    %c0_i32_1 = arith.constant 0 : i32
    return %c0_i32, %c0_i32_0 : i32, i32
  }
}

</mosaic_0001>

<bundles_post_ra>
// kernel: gru_forecaster.1
= control target key start
LH: loop header
LB: loop body
LE: loop exit
PB: predicated region body
PF: predicated region fallthrough
CT: control target
= control target key end

     0   :  { %v45_v0 = vlaneseq  ;;  %v2560_v1 = vmov 0.0   ;;  %vm73_vm0 = vcmask 7168   ;;  %vm98_vm1 = vcmask 1040384   ;;  %s2550_s1 = inlined_call_operand.vmem [shape: f32[1,384], index: 1, kind: input, shape index: {}]   ;;  %s2551_s0 = inlined_call_operand.vmem [shape: f32[64,1], index: 0, kind: input, shape index: {}]   ;;  %s2552_s2 = inlined_call_operand.vmem [shape: bf16[128,384], index: 2, kind: input, shape index: {}]   ;;  %s2553_s3 = inlined_call_operand.vmem [shape: f32[1,384], index: 3, kind: input, shape index: {}]   ;;  %s2554_s4 = inlined_call_operand.vmem [shape: f32[1,128], index: 4, kind: input, shape index: {}]   ;;  %s2555_s6 = inlined_call_operand.<no memory space> [shape: f32[1,1], index: 6, kind: input, shape index: {}]   ;;  %s2556_s5 = inlined_call_operand.vmem [shape: f32[1,128], index: 5, kind: input, shape index: {}]   ;;  %s2557_s7 = inlined_call_operand.vmem [shape: f32[8,1], index: 7, kind: output, shape index: {}]  }
   0x1   :  { %169 = vmatprep.mubr.f32.mxu0 %v2560_v1  ;;  %v34_v2 = vld [vmem:[%s2551_s0] sm:$0xff]  ;;  %v1923_v10 = vld [vmem:[%s2552_s2 + $0xac] ss:$12 sps:$4 sm:$0xff]   ;;  %v1928_v11 = vld [vmem:[%s2552_s2 + $0xa8] ss:$12 sps:$4 sm:$0xff]   ;;  %vm1860_vm2 = vmmov 0  }
   0x2   :  { %v1907_v3 = vshrl.u32 %v45_v0, 7  ;;  %1551 = vmatprep.mubr.msk.f32.mxu1 %vm73_vm0, %v34_v2  ;;  %v42_v4 = vld [vmem:[%s2550_s1] sm:$0x7]  ;;  %v35_v14 = vld [vmem:[%s2551_s0 + $0x8] sm:$0xff]  ;;  %v1950_v15 = vld [vmem:[%s2552_s2 + $0x90] ss:$12 sps:$4 sm:$0xff]  }
   0x3   :  { %v1936_v13 = vld [vmem:[%s2552_s2 + $0x94] ss:$12 sps:$4 sm:$0xff]   ;;  %v1956_v16 = vld [vmem:[%s2552_s2 + $0x7c] ss:$12 sps:$4 sm:$0xff]   ;;  %v1971_v18 = vld [vmem:[%s2552_s2 + $0x78] ss:$12 sps:$4 sm:$0xff]  }
   0x4   :  { %v51_v5 = vsub.s32 1, %v1907_v3  ;;  %v47_v6 = vsub.s32 0, %v1907_v3  ;;  %v55_v7 = vsub.s32 2, %v1907_v3  ;;  %v36_v17 = vld [vmem:[%s2551_s0 + $0x10] sm:$0xff]  ;;  %v37_v21 = vld [vmem:[%s2551_s0 + $0x18] sm:$0xff]  ;;  %v38_v24 = vld [vmem:[%s2551_s0 + $0x20] sm:$0xff] }
   0x5   :  { %v1976_v19 = vld [vmem:[%s2552_s2 + $0xb0] ss:$12 sps:$4 sm:$0xff]   ;;  %v1991_v22 = vld [vmem:[%s2552_s2 + $0x98] ss:$12 sps:$4 sm:$0xff]   ;;  %v1997_v23 = vld [vmem:[%s2552_s2 + $0x60] ss:$12 sps:$4 sm:$0xff]  }
   0x6   :  { %v68_v8 = vrot.slane %v42_v4, %v51_v5  ;;  %v64_v9 = vrot.slane %v42_v4, %v47_v6  ;;  %v72_v12 = vrot.slane %v42_v4, %v55_v7  ;;  %v1982_v20 = vld [vmem:[%s2552_s2 + $0x64] ss:$12 sps:$4 sm:$0xff]   ;;  %v2009_v25 = vld [vmem:[%s2552_s2 + $0x4c] ss:$12 sps:$4 sm:$0xff]   ;;  %v2026_v27 = vld [vmem:[%s2552_s2 + $0x48] ss:$12 sps:$4 sm:$0xff]  }
   0x7   :  { %v2016_v26 = vld [vmem:[%s2552_s2 + $0x80] ss:$12 sps:$4 sm:$0xff]   ;;  %v40_v30 = vld [vmem:[%s2551_s0 + $0x30] sm:$0xff]  ;;  %v41_v33 = vld [vmem:[%s2551_s0 + $0x38] sm:$0xff]  ;;  %v2558_v41 = vmov 0   ;;  %v1862_v43 = vmov 0.0|0.0  }
   0x8   :  { %1406 = vmatprep.subr.msk.mxu0 %vm98_vm1, %v68_v8  ;;  %1549 = vmatprep.subr.msk.mxu1 %vm98_vm1, %v72_v12  ;;  %v39_v28 = vld [vmem:[%s2551_s0 + $0x28] sm:$0xff]  ;;  %v2035_v29 = vld [vmem:[%s2552_s2 + $0x34] ss:$12 sps:$4 sm:$0xff]   ;;  %v2055_v32 = vld [vmem:[%s2552_s2 + $0x30] ss:$12 sps:$4 sm:$0xff]  }
   0x9   :  { %1407 = vmatpush1.msk.msra.mxu0 %vm98_vm1, %v64_v9  ;;  %1550 = vmatpush3.msk.msra.mxu1 %vm98_vm1, %v72_v12  ;;  %v2045_v31 = vld [vmem:[%s2552_s2 + $0x68] ss:$12 sps:$4 sm:$0xff]   ;;  %v2071_v35 = vld [vmem:[%s2552_s2 + $0x50] ss:$12 sps:$4 sm:$0xff]   ;;  %v2082_v36 = vld [vmem:[%s2552_s2 + $0x18] ss:$12 sps:$4 sm:$0xff]  }
   0xa   :  { %1408 = vmatmul.mubr.msk.f32.vlgmr.msra.gmra.mxu0 %vm73_vm0, %v34_v2  ;;  %513 = vmatprep.subr.bf16.mxu0 %v1923_v10  ;;  %v2064_v34 = vld [vmem:[%s2552_s2 + $0x1c] ss:$12 sps:$4 sm:$0xff]   ;;  %v2088_v37 = vld [vmem:[%s2552_s2 + $0x4] ss:$12 sps:$4 sm:$0xff]   ;;  %v2103_v39 = vld [vmem:[%s2552_s2] ss:$12 sps:$4 sm:$0xff]  }
   0xb   :  { %514 = vmatpush1.bf16.msra.mxu0 %v1928_v11  ;;  %175 = vmatprep.mubr.f32.mxu0 %v2560_v1  ;;  %v2094_v38 = vld [vmem:[%s2552_s2 + $0x38] ss:$12 sps:$4 sm:$0xff]   ;;  %v2110_v40 = vld [vmem:[%s2552_s2 + $0x20] ss:$12 sps:$4 sm:$0xff]   ;;  %v2121_v42 = vld [vmem:[%s2552_s2 + $0x8] ss:$12 sps:$4 sm:$0xff]  }
   0xc   :  { %515 = vmatprep.subr.bf16.mxu0 %v1936_v13  ;;  %1563 = vmatprep.subr.bf16.mxu1 %v2560_v1  ;;  %v43_v44 = vld [vmem:[%s2553_s3] sm:$0x7] }
   0xd   :  { %1552 = vmatmul.mubr.msk.f32.vlgmr.msra.gmra.mxu1 %vm73_vm0, %v35_v14  ;;  %v2166_v45 = vrot.slane %v43_v44, %v55_v7  ;;  %v48_v48 = vrot.slane %v43_v44, %v47_v6  ;;  %v52_v52 = vrot.slane %v43_v44, %v51_v5 }
   0xe   :  { %1409 = vmatmul.mubr.msk.f32.gmra.mxu0 %vm73_vm0, %v35_v14  ;;  %1554 = vmatprep.mubr.msk.f32.mxu1 %vm73_vm0, %v36_v17 }
   0xf   :  { %516 = vmatpush1.bf16.msra.mxu0 %v1950_v15  ;;  %181 = vmatprep.mubr.f32.mxu0 %v2560_v1 }
  0x10   :  { %517 = vmatprep.subr.bf16.mxu0 %v1956_v16  ;;  %1564 = vmatpush3.bf16.msra.mxu1 %v1976_v19 }
  0x11   :  { %1565 = vmatprep.subr.bf16.mxu1 %v2560_v1  ;;  %1555 = vmatmul.mubr.msk.f32.gmra.mxu1 %vm73_vm0, %v37_v21 }
  0x12   :  { %1410 = vmatmul.mubr.msk.f32.gmra.mxu0 %vm73_vm0, %v36_v17  ;;  %1557 = vmatprep.mubr.msk.f32.mxu1 %vm73_vm0, %v38_v24 }
  0x13   :  { %518 = vmatpush1.bf16.msra.mxu0 %v1971_v18  ;;  %187 = vmatprep.mubr.f32.mxu0 %v2560_v1 }
  0x14   :  { %519 = vmatprep.subr.bf16.mxu0 %v1982_v20  ;;  %1566 = vmatpush3.bf16.msra.mxu1 %v1991_v22 }
  0x15   :  { %1567 = vmatprep.subr.bf16.mxu1 %v2560_v1  ;;  %1558 = vmatmul.mubr.msk.f32.gmra.mxu1 %vm73_vm0, %v39_v28 }
  0x16   :  { %1411 = vmatmul.mubr.msk.f32.gmra.mxu0 %vm73_vm0, %v37_v21  ;;  %1560 = vmatprep.mubr.msk.f32.mxu1 %vm73_vm0, %v40_v30 }
  0x17   :  { %520 = vmatpush1.bf16.msra.mxu0 %v1997_v23  ;;  %193 = vmatprep.mubr.f32.mxu0 %v2560_v1 }
  0x18   :  { %521 = vmatprep.subr.bf16.mxu0 %v2009_v25  ;;  %1568 = vmatpush3.bf16.msra.mxu1 %v2016_v26 }
  0x19   :  { %1569 = vmatprep.subr.bf16.mxu1 %v2560_v1  ;;  %1561 = vmatmul.mubr.msk.f32.gmra.mxu1 %vm73_vm0, %v41_v33 }
  0x1a   :  { %1412 = vmatmul.mubr.msk.f32.gmra.mxu0 %vm73_vm0, %v38_v24  ;;  %1579 = vmatprep.mubr.msk.bf16.mxu1 %vm1860_vm2, %v2560_v1 }
  0x1b   :  { %522 = vmatpush1.bf16.msra.mxu0 %v2026_v27  ;;  %199 = vmatprep.mubr.f32.mxu0 %v2560_v1 }
  0x1c   :  { %523 = vmatprep.subr.bf16.mxu0 %v2035_v29  ;;  %1570 = vmatpush3.bf16.msra.mxu1 %v2045_v31 }
  0x1d   :  { %1571 = vmatprep.subr.bf16.mxu1 %v2560_v1 }
  0x1e   :  { %1413 = vmatmul.mubr.msk.f32.gmra.mxu0 %vm73_vm0, %v39_v28 }
  0x1f   :  { %524 = vmatpush1.bf16.msra.mxu0 %v2055_v32  ;;  %205 = vmatprep.mubr.f32.mxu0 %v2560_v1 }
  0x20   :  { %525 = vmatprep.subr.bf16.mxu0 %v2064_v34  ;;  %1572 = vmatpush3.bf16.msra.mxu1 %v2071_v35 }
  0x21   :  { %1573 = vmatprep.subr.bf16.mxu1 %v2560_v1 }
  0x22   :  { %1414 = vmatmul.mubr.msk.f32.gmra.mxu0 %vm73_vm0, %v40_v30 }
  0x23   :  { %526 = vmatpush1.bf16.msra.mxu0 %v2082_v36  ;;  %211 = vmatprep.mubr.f32.mxu0 %v2560_v1 }
  0x24   :  { %527 = vmatprep.subr.bf16.mxu0 %v2088_v37  ;;  %1574 = vmatpush3.bf16.msra.mxu1 %v2094_v38 }
  0x25   :  { %1575 = vmatprep.subr.bf16.mxu1 %v2560_v1 }
  0x26   :  { %1415 = vmatmul.mubr.msk.f32.gmra.mxu0 %vm73_vm0, %v41_v33 }
  0x27   :  { %528 = vmatpush1.bf16.msra.mxu0 %v2103_v39  ;;  %545 = vmatprep.mubr.bf16.mxu0 %v2558_v41 }
  0x28   :  { %627 = vmatprep.subr.bf16.mxu0 %v1923_v10  ;;  %1576 = vmatpush3.bf16.msra.mxu1 %v2110_v40 }
  0x29   :  { %1577 = vmatprep.subr.bf16.mxu1 %v2560_v1 }
  0x2a   :  { %546 = vmatmul.mubr.bf16.vlgmr.msra.gmra.mxu0 %v1862_v43 }
  0x2b   :  { %628 = vmatpush1.bf16.msra.mxu0 %v1928_v11  ;;  %659 = vmatprep.mubr.bf16.mxu0 %v2558_v41 }
  0x2c   :  { %629 = vmatprep.subr.bf16.mxu0 %v1936_v13  ;;  %1578 = vmatpush3.bf16.msra.mxu1 %v2121_v42 }
  0x2d   :  { %1583 = vmatprep.subr.bf16.mxu1 %v2560_v1 }
  0x2f   :  { %630 = vmatpush1.bf16.msra.mxu0 %v1950_v15  ;;  %1580 = vmatmul.mubr.bf16.vlgmr.msra.gmra.mxu1 %v1862_v43 }
  0x30   :  { %631 = vmatprep.subr.bf16.mxu0 %v1956_v16  ;;  %1584 = vmatpush3.bf16.msra.mxu1 %v1976_v19 }
  0x31   :  { %1599 = vmatprep.mubr.msk.bf16.mxu1 %vm1860_vm2, %v2560_v1  ;;  %1585 = vmatprep.subr.bf16.mxu1 %v2560_v1 }
  0x33   :  { %632 = vmatpush1.bf16.msra.mxu0 %v1971_v18 }
  0x34   :  { %633 = vmatprep.subr.bf16.mxu0 %v1982_v20  ;;  %1586 = vmatpush3.bf16.msra.mxu1 %v1991_v22 }
  0x35   :  { %1587 = vmatprep.subr.bf16.mxu1 %v2560_v1 }
  0x37   :  { %634 = vmatpush1.bf16.msra.mxu0 %v1997_v23 }
  0x38   :  { %635 = vmatprep.subr.bf16.mxu0 %v2009_v25  ;;  %1588 = vmatpush3.bf16.msra.mxu1 %v2016_v26 }
  0x39   :  { %1589 = vmatprep.subr.bf16.mxu1 %v2560_v1 }
  0x3b   :  { %636 = vmatpush1.bf16.msra.mxu0 %v2026_v27 }
  0x3c   :  { %637 = vmatprep.subr.bf16.mxu0 %v2035_v29  ;;  %1590 = vmatpush3.bf16.msra.mxu1 %v2045_v31 }
  0x3d   :  { %1591 = vmatprep.subr.bf16.mxu1 %v2560_v1 }
  0x3f   :  { %638 = vmatpush1.bf16.msra.mxu0 %v2055_v32 }
  0x40   :  { %639 = vmatprep.subr.bf16.mxu0 %v2064_v34  ;;  %1592 = vmatpush3.bf16.msra.mxu1 %v2071_v35 }
  0x41   :  { %1593 = vmatprep.subr.bf16.mxu1 %v2560_v1 }
  0x43   :  { %640 = vmatpush1.bf16.msra.mxu0 %v2082_v36 }
  0x44   :  { %641 = vmatprep.subr.bf16.mxu0 %v2088_v37  ;;  %1594 = vmatpush3.bf16.msra.mxu1 %v2094_v38 }
  0x45   :  { %1595 = vmatprep.subr.bf16.mxu1 %v2560_v1 }
  0x47   :  { %642 = vmatpush1.bf16.msra.mxu0 %v2103_v39 }
  0x48   :  { %735 = vmatprep.subr.bf16.mxu0 %v1923_v10  ;;  %1596 = vmatpush3.bf16.msra.mxu1 %v2110_v40 }
  0x49   :  { %1597 = vmatprep.subr.bf16.mxu1 %v2560_v1 }
  0x4c   :  { %1598 = vmatpush3.bf16.msra.mxu1 %v2121_v42 }
  0x4d   :  { %1603 = vmatprep.subr.bf16.mxu1 %v2560_v1 }
  0xca   :  { %v171_v46 = vpop.f32.mrf.mxu0 }
  0xcc   :  { %v173_v47 = vpop.f32.mrf.mxu0 }
  0xcd   :  { %v1553_v49 = vpop.f32.mrf.mxu1 }
  0xce   :  { %v177_v50 = vpop.f32.mrf.mxu0  ;;  %v2171_v51 = vadd.f32 %v1553_v49, %v2166_v45 }
  0xcf   :  { %v2175_v53 = vadd.f32 %v177_v50, %v48_v48  ;;  %v284_v57 = vpop.f32.mrf.mxu1 }
  0xd0   :  { %v179_v54 = vpop.f32.mrf.mxu0 }
  0xd1   :  { %v2177_v55 = vadd.f32 %v179_v54, %v52_v52  ;;  %v1556_v60 = vpop.f32.mrf.mxu1 }
  0xd2   :  { %v183_v56 = vpop.f32.mrf.mxu0  ;;  %v2184_v62 = vadd.f32 %v1556_v60, %v2166_v45 }
  0xd3   :  { %v2179_v58 = vadd.f32 %v183_v56, %v48_v48  ;;  %v294_v0 = vpop.f32.mrf.mxu1 }
  0xd4   :  { %v185_v59 = vpop.f32.mrf.mxu0  ;;  %v2189_v3 = vadd.f32 %v294_v0, %v2166_v45 }
  0xd5   :  { %v2181_v61 = vadd.f32 %v185_v59, %v52_v52  ;;  %v1559_v5 = vpop.f32.mrf.mxu1 }
  0xd6   :  { %v189_v63 = vpop.f32.mrf.mxu0  ;;  %v2194_v7 = vadd.f32 %v1559_v5, %v2166_v45  ;;  %v172_v5 = vadd.f32 %v171_v46, %v48_v48 }
  0xd7   :  { %v2186_v2 = vadd.f32 %v189_v63, %v48_v48  ;;  %v304_v9 = vpop.f32.mrf.mxu1 }
  0xd8   :  { %v191_v4 = vpop.f32.mrf.mxu0  ;;  %v2199_v14 = vadd.f32 %v304_v9, %v2166_v45 }
  0xd9   :  { %v2191_v6 = vadd.f32 %v191_v4, %v52_v52  ;;  %v1562_v21 = vpop.f32.mrf.mxu1 }
  0xda   :  { %v195_v8 = vpop.f32.mrf.mxu0  ;;  %v2204_v28 = vadd.f32 %v1562_v21, %v2166_v45 }
  0xdb   :  { %v2196_v12 = vadd.f32 %v195_v8, %v48_v48  ;;  %v314_v33 = vpop.f32.mrf.mxu1 }
  0xdc   :  { %v197_v17 = vpop.f32.mrf.mxu0  ;;  %2562 = vst [vmem:[#allocation5_spill] sm:$0xff] %v2204_v28  ;;  %v2209_v44 = vadd.f32 %v314_v33, %v2166_v45 }
  0xdd   :  { %v2201_v24 = vadd.f32 %v197_v17, %v52_v52 }
  0xde   :  { %v201_v30 = vpop.f32.mrf.mxu0  ;;  %2563 = vst [vmem:[#allocation6_spill] sm:$0xff] %v2209_v44 }
  0xdf   :  { %v2206_v43 = vadd.f32 %v201_v30, %v48_v48 }
  0xe0   :  { %v203_v49 = vpop.f32.mrf.mxu0 }
  0xe1   :  { %v2211_v50 = vadd.f32 %v203_v49, %v52_v52  ;;  %v174_v49 = vadd.f32 %v173_v47, %v52_v52 }
  0xe2   :  { %v207_v54 = vpop.f32.mrf.mxu0 }
  0xe3   :  { %v2213_v56 = vadd.f32 %v207_v54, %v48_v48 }
  0xe4   :  { %v209_v59 = vpop.f32.mrf.mxu0 }
  0xe5   :  { %v2215_v60 = vadd.f32 %v209_v59, %v52_v52 }
  0xe6   :  { %v213_v63 = vpop.f32.mrf.mxu0 }
  0xe7   :  { %2564 = vst [vmem:[#allocation7_spill] sm:$0xff] %v2215_v60  ;;  %v2217_v0 = vadd.f32 %v213_v63, %v48_v48  ;;  %v2224_v48 = vld [vmem:[%s2554_s4] ss:$0 sm:$0xff] }
  0xe8   :  { %v215_v4 = vpop.f32.mrf.mxu0 }
  0xe9   :  { %2565 = vst [vmem:[#allocation8_spill] sm:$0xff] %v2217_v0  ;;  %v2219_v8 = vadd.f32 %v215_v4, %v52_v52  ;;  %v285_v52 = vadd.f32 %v284_v57, %v2166_v45  ;;  %v2566_v45 = vmov 0.0   ;;  %v2567_v57 = vmov 0  }
  0xea   :  { %v547_v9 = vpop.f32.mrf.mxu0 }
  0xeb   :  { %v594_v17 = vadd.f32 %v547_v9, %v172_v5 }
  0xec   :  { %v549_v21 = vpop.f32.mrf.mxu0 }
  0xed   :  { %v1449_v30 = vmul.f32 -1.442695, %v594_v17  ;;  %v595_v1 = vadd.f32 %v549_v21, %v174_v49 }
  0xee   :  { %v551_v33 = vpop.f32.mrf.mxu0 }
  0xef   :  { %1759 = vpow2.f32 %v1449_v30  ;;  %v588_v54 = vpop.f32.mrf.mxu1  ;;  %v1450_v44 = vmul.f32 -1.442695, %v595_v1 }
  0xf0   :  { %v552_v41 = vpop.f32.mrf.mxu0  ;;  %v614_v47 = vadd.f32 %v2224_v48, %v588_v54 }
  0xf1   :  { %v1581_v28 = vpop.f32.mrf.mxu1  ;;  %1761 = vpow2.f32 %v1450_v44 }
  0xf3   :  { %v591_v59 = vpop.f32.mrf.mxu1 }
  0xf5   :  { %v1582_v60 = vpop.f32.mrf.mxu1 }
  0xfc   :  { %v1760_v63 = vpop.eup %1759 }
  0xfd   :  { %v602_v0 = vadd.f32 1.0, %v1760_v63 }
  0xfe   :  { %v1762_v46 = vpop.eup %1761 }
  0xff   :  { %1763 = vrcp.f32 %v602_v0  ;;  %v603_v4 = vadd.f32 1.0, %v1762_v46 }
 0x101   :  { %1765 = vrcp.f32 %v603_v4 }
 0x10c   :  { %v1764_v41 = vpop.eup %1763 }
 0x10d   :  { %v615_v28 = vmul.f32 %v1764_v41, %v614_v47 }
 0x10e   :  { %v1766_v44 = vpop.eup %1765 }
 0x10f   :  { %v616_v1 = vadd.f32 %v615_v28, %v285_v52  ;;  %v618_v60 = vsub.f32 1.0, %v1766_v44  ;;  %v620_v9 = vmul.f32 0.0, %v1766_v44 }
 0x111   :  { %1767 = vtanh.f32 %v616_v1 }
 0x11e   :  { %v1768_v5 = vpop.eup %1767 }
 0x11f   :  { %v619_v0 = vmul.f32 %v1768_v5, %v618_v60 }
 0x121   :  { %v2228_v17 = vadd.f32 %v620_v9, %v619_v0 }
 0x123   :  { %v626_v21 = vpack.c.bf16 %v2228_v17, %v2228_v17 }
 0x125   :  { %660 = vmatmul.mubr.bf16.vlgmr.msra.gmra.mxu0 %v626_v21  ;;  %1600 = vmatmul.mubr.bf16.vlgmr.msra.gmra.mxu1 %v626_v21 }
 0x126   :  { %736 = vmatpush1.bf16.msra.mxu0 %v1928_v11  ;;  %1604 = vmatpush3.bf16.msra.mxu1 %v1976_v19 }
 0x127   :  { %737 = vmatprep.subr.bf16.mxu0 %v1936_v13  ;;  %1605 = vmatprep.subr.bf16.mxu1 %v2566_v45 }
 0x128   :  { %767 = vmatprep.mubr.bf16.mxu0 %v2567_v57  ;;  %1619 = vmatprep.mubr.msk.bf16.mxu1 %vm1860_vm2, %v2566_v45 }
 0x12a   :  { %738 = vmatpush1.bf16.msra.mxu0 %v1950_v15  ;;  %1606 = vmatpush3.bf16.msra.mxu1 %v1991_v22 }
 0x12b   :  { %739 = vmatprep.subr.bf16.mxu0 %v1956_v16  ;;  %1607 = vmatprep.subr.bf16.mxu1 %v2566_v45 }
 0x12e   :  { %740 = vmatpush1.bf16.msra.mxu0 %v1971_v18  ;;  %1608 = vmatpush3.bf16.msra.mxu1 %v2016_v26 }
 0x12f   :  { %741 = vmatprep.subr.bf16.mxu0 %v1982_v20  ;;  %1609 = vmatprep.subr.bf16.mxu1 %v2566_v45 }
 0x132   :  { %742 = vmatpush1.bf16.msra.mxu0 %v1997_v23  ;;  %1610 = vmatpush3.bf16.msra.mxu1 %v2045_v31 }
 0x133   :  { %743 = vmatprep.subr.bf16.mxu0 %v2009_v25  ;;  %1611 = vmatprep.subr.bf16.mxu1 %v2566_v45 }
 0x136   :  { %744 = vmatpush1.bf16.msra.mxu0 %v2026_v27  ;;  %1612 = vmatpush3.bf16.msra.mxu1 %v2071_v35 }
 0x137   :  { %745 = vmatprep.subr.bf16.mxu0 %v2035_v29  ;;  %1613 = vmatprep.subr.bf16.mxu1 %v2566_v45 }
 0x13a   :  { %746 = vmatpush1.bf16.msra.mxu0 %v2055_v32  ;;  %1614 = vmatpush3.bf16.msra.mxu1 %v2094_v38 }
 0x13b   :  { %747 = vmatprep.subr.bf16.mxu0 %v2064_v34  ;;  %1615 = vmatprep.subr.bf16.mxu1 %v2566_v45 }
 0x13e   :  { %748 = vmatpush1.bf16.msra.mxu0 %v2082_v36  ;;  %1616 = vmatpush3.bf16.msra.mxu1 %v2110_v40 }
 0x13f   :  { %749 = vmatprep.subr.bf16.mxu0 %v2088_v37  ;;  %1617 = vmatprep.subr.bf16.mxu1 %v2566_v45 }
 0x142   :  { %750 = vmatpush1.bf16.msra.mxu0 %v2103_v39  ;;  %1618 = vmatpush3.bf16.msra.mxu1 %v2121_v42 }
 0x143   :  { %843 = vmatprep.subr.bf16.mxu0 %v1923_v10  ;;  %1623 = vmatprep.subr.bf16.mxu1 %v2566_v45 }
 0x1e5   :  { %v661_v30 = vpop.f32.mrf.mxu0  ;;  %v702_v33 = vpop.f32.mrf.mxu1 }
 0x1e6   :  { %v708_v49 = vadd.f32 %v661_v30, %v2175_v53  ;;  %v722_v0 = vadd.f32 %v2224_v48, %v702_v33 }
 0x1e7   :  { %v663_v54 = vpop.f32.mrf.mxu0  ;;  %v1601_v59 = vpop.f32.mrf.mxu1 }
 0x1e8   :  { %v1452_v63 = vmul.f32 -1.442695, %v708_v49  ;;  %v709_v52 = vadd.f32 %v663_v54, %v2177_v55 }
 0x1e9   :  { %v665_v46 = vpop.f32.mrf.mxu0  ;;  %v705_v4 = vpop.f32.mrf.mxu1 }
 0x1ea   :  { %1769 = vpow2.f32 %v1452_v63  ;;  %v1453_v28 = vmul.f32 -1.442695, %v709_v52 }
 0x1eb   :  { %v666_v47 = vpop.f32.mrf.mxu0  ;;  %v1602_v41 = vpop.f32.mrf.mxu1 }
 0x1ec   :  { %1771 = vpow2.f32 %v1453_v28 }
 0x1f7   :  { %v1770_v1 = vpop.eup %1769 }
 0x1f8   :  { %v716_v44 = vadd.f32 1.0, %v1770_v1 }
 0x1f9   :  { %v1772_v60 = vpop.eup %1771 }
 0x1fa   :  { %1773 = vrcp.f32 %v716_v44  ;;  %v717_v5 = vadd.f32 1.0, %v1772_v60 }
 0x1fc   :  { %1775 = vrcp.f32 %v717_v5 }
 0x207   :  { %v1774_v53 = vpop.eup %1773 }
 0x208   :  { %v723_v9 = vmul.f32 %v1774_v53, %v722_v0 }
 0x209   :  { %v1776_v30 = vpop.eup %1775 }
 0x20a   :  { %v724_v21 = vadd.f32 %v723_v9, %v2171_v51  ;;  %v726_v49 = vsub.f32 1.0, %v1776_v30  ;;  %v728_v55 = vmul.f32 %v1776_v30, %v2228_v17 }
 0x20c   :  { %1777 = vtanh.f32 %v724_v21 }
 0x219   :  { %v1778_v59 = vpop.eup %1777 }
 0x21a   :  { %v727_v63 = vmul.f32 %v1778_v59, %v726_v49 }
 0x21c   :  { %v2272_v54 = vadd.f32 %v728_v55, %v727_v63 }
 0x21e   :  { %v734_v46 = vpack.c.bf16 %v2272_v54, %v2272_v54 }
 0x220   :  { %768 = vmatmul.mubr.bf16.vlgmr.msra.gmra.mxu0 %v734_v46  ;;  %1620 = vmatmul.mubr.bf16.vlgmr.msra.gmra.mxu1 %v734_v46 }
 0x221   :  { %844 = vmatpush1.bf16.msra.mxu0 %v1928_v11  ;;  %1624 = vmatpush3.bf16.msra.mxu1 %v1976_v19 }
 0x222   :  { %845 = vmatprep.subr.bf16.mxu0 %v1936_v13  ;;  %1625 = vmatprep.subr.bf16.mxu1 %v2566_v45 }
 0x223   :  { %875 = vmatprep.mubr.bf16.mxu0 %v2567_v57  ;;  %1639 = vmatprep.mubr.msk.bf16.mxu1 %vm1860_vm2, %v2566_v45 }
 0x225   :  { %846 = vmatpush1.bf16.msra.mxu0 %v1950_v15  ;;  %1626 = vmatpush3.bf16.msra.mxu1 %v1991_v22 }
 0x226   :  { %847 = vmatprep.subr.bf16.mxu0 %v1956_v16  ;;  %1627 = vmatprep.subr.bf16.mxu1 %v2566_v45 }
 0x229   :  { %848 = vmatpush1.bf16.msra.mxu0 %v1971_v18  ;;  %1628 = vmatpush3.bf16.msra.mxu1 %v2016_v26 }
 0x22a   :  { %849 = vmatprep.subr.bf16.mxu0 %v1982_v20  ;;  %1629 = vmatprep.subr.bf16.mxu1 %v2566_v45 }
 0x22d   :  { %850 = vmatpush1.bf16.msra.mxu0 %v1997_v23  ;;  %1630 = vmatpush3.bf16.msra.mxu1 %v2045_v31 }
 0x22e   :  { %851 = vmatprep.subr.bf16.mxu0 %v2009_v25  ;;  %1631 = vmatprep.subr.bf16.mxu1 %v2566_v45 }
 0x231   :  { %852 = vmatpush1.bf16.msra.mxu0 %v2026_v27  ;;  %1632 = vmatpush3.bf16.msra.mxu1 %v2071_v35 }
 0x232   :  { %853 = vmatprep.subr.bf16.mxu0 %v2035_v29  ;;  %1633 = vmatprep.subr.bf16.mxu1 %v2566_v45 }
 0x235   :  { %854 = vmatpush1.bf16.msra.mxu0 %v2055_v32  ;;  %1634 = vmatpush3.bf16.msra.mxu1 %v2094_v38 }
 0x236   :  { %855 = vmatprep.subr.bf16.mxu0 %v2064_v34  ;;  %1635 = vmatprep.subr.bf16.mxu1 %v2566_v45 }
 0x239   :  { %856 = vmatpush1.bf16.msra.mxu0 %v2082_v36  ;;  %1636 = vmatpush3.bf16.msra.mxu1 %v2110_v40 }
 0x23a   :  { %857 = vmatprep.subr.bf16.mxu0 %v2088_v37  ;;  %1637 = vmatprep.subr.bf16.mxu1 %v2566_v45 }
 0x23d   :  { %858 = vmatpush1.bf16.msra.mxu0 %v2103_v39  ;;  %1638 = vmatpush3.bf16.msra.mxu1 %v2121_v42 }
 0x23e   :  { %951 = vmatprep.subr.bf16.mxu0 %v1923_v10  ;;  %1643 = vmatprep.subr.bf16.mxu1 %v2566_v45 }
 0x2e0   :  { %v769_v51 = vpop.f32.mrf.mxu0  ;;  %v810_v17 = vpop.f32.mrf.mxu1 }
 0x2e1   :  { %v816_v33 = vadd.f32 %v769_v51, %v2179_v58  ;;  %v830_v30 = vadd.f32 %v2224_v48, %v810_v17 }
 0x2e2   :  { %v771_v4 = vpop.f32.mrf.mxu0  ;;  %v1621_v47 = vpop.f32.mrf.mxu1 }
 0x2e3   :  { %v1454_v41 = vmul.f32 -1.442695, %v816_v33  ;;  %v817_v60 = vadd.f32 %v771_v4, %v2181_v61 }
 0x2e4   :  { %v773_v52 = vpop.f32.mrf.mxu0  ;;  %v813_v28 = vpop.f32.mrf.mxu1 }
 0x2e5   :  { %1779 = vpow2.f32 %v1454_v41  ;;  %v1455_v5 = vmul.f32 -1.442695, %v817_v60 }
 0x2e6   :  { %v774_v1 = vpop.f32.mrf.mxu0  ;;  %v1622_v44 = vpop.f32.mrf.mxu1 }
 0x2e7   :  { %1781 = vpow2.f32 %v1455_v5 }
 0x2f2   :  { %v1780_v0 = vpop.eup %1779 }
 0x2f3   :  { %v824_v53 = vadd.f32 1.0, %v1780_v0 }
 0x2f4   :  { %v1782_v9 = vpop.eup %1781 }
 0x2f5   :  { %1783 = vrcp.f32 %v824_v53  ;;  %v825_v21 = vadd.f32 1.0, %v1782_v9 }
 0x2f7   :  { %1785 = vrcp.f32 %v825_v21 }
 0x302   :  { %v1784_v58 = vpop.eup %1783 }
 0x303   :  { %v831_v49 = vmul.f32 %v1784_v58, %v830_v30 }
 0x304   :  { %v1786_v63 = vpop.eup %1785 }
 0x305   :  { %v832_v59 = vadd.f32 %v831_v49, %v2189_v3  ;;  %v834_v55 = vsub.f32 1.0, %v1786_v63  ;;  %v836_v61 = vmul.f32 %v1786_v63, %v2272_v54 }
 0x307   :  { %1787 = vtanh.f32 %v832_v59 }
 0x314   :  { %v1788_v46 = vpop.eup %1787 }
 0x315   :  { %v835_v51 = vmul.f32 %v1788_v46, %v834_v55 }
 0x317   :  { %v2316_v33 = vadd.f32 %v836_v61, %v835_v51 }
 0x319   :  { %v842_v4 = vpack.c.bf16 %v2316_v33, %v2316_v33 }
 0x31b   :  { %876 = vmatmul.mubr.bf16.vlgmr.msra.gmra.mxu0 %v842_v4  ;;  %1640 = vmatmul.mubr.bf16.vlgmr.msra.gmra.mxu1 %v842_v4 }
 0x31c   :  { %952 = vmatpush1.bf16.msra.mxu0 %v1928_v11  ;;  %1644 = vmatpush3.bf16.msra.mxu1 %v1976_v19 }
 0x31d   :  { %953 = vmatprep.subr.bf16.mxu0 %v1936_v13  ;;  %1645 = vmatprep.subr.bf16.mxu1 %v2566_v45 }
 0x31e   :  { %983 = vmatprep.mubr.bf16.mxu0 %v2567_v57  ;;  %1659 = vmatprep.mubr.msk.bf16.mxu1 %vm1860_vm2, %v2566_v45 }
 0x320   :  { %954 = vmatpush1.bf16.msra.mxu0 %v1950_v15  ;;  %1646 = vmatpush3.bf16.msra.mxu1 %v1991_v22 }
 0x321   :  { %955 = vmatprep.subr.bf16.mxu0 %v1956_v16  ;;  %1647 = vmatprep.subr.bf16.mxu1 %v2566_v45 }
 0x324   :  { %956 = vmatpush1.bf16.msra.mxu0 %v1971_v18  ;;  %1648 = vmatpush3.bf16.msra.mxu1 %v2016_v26 }
 0x325   :  { %957 = vmatprep.subr.bf16.mxu0 %v1982_v20  ;;  %1649 = vmatprep.subr.bf16.mxu1 %v2566_v45 }
 0x328   :  { %958 = vmatpush1.bf16.msra.mxu0 %v1997_v23  ;;  %1650 = vmatpush3.bf16.msra.mxu1 %v2045_v31 }
 0x329   :  { %959 = vmatprep.subr.bf16.mxu0 %v2009_v25  ;;  %1651 = vmatprep.subr.bf16.mxu1 %v2566_v45 }
 0x32c   :  { %960 = vmatpush1.bf16.msra.mxu0 %v2026_v27  ;;  %1652 = vmatpush3.bf16.msra.mxu1 %v2071_v35 }
 0x32d   :  { %961 = vmatprep.subr.bf16.mxu0 %v2035_v29  ;;  %1653 = vmatprep.subr.bf16.mxu1 %v2566_v45 }
 0x330   :  { %962 = vmatpush1.bf16.msra.mxu0 %v2055_v32  ;;  %1654 = vmatpush3.bf16.msra.mxu1 %v2094_v38 }
 0x331   :  { %963 = vmatprep.subr.bf16.mxu0 %v2064_v34  ;;  %1655 = vmatprep.subr.bf16.mxu1 %v2566_v45 }
 0x334   :  { %964 = vmatpush1.bf16.msra.mxu0 %v2082_v36  ;;  %1656 = vmatpush3.bf16.msra.mxu1 %v2110_v40 }
 0x335   :  { %965 = vmatprep.subr.bf16.mxu0 %v2088_v37  ;;  %1657 = vmatprep.subr.bf16.mxu1 %v2566_v45 }
 0x338   :  { %966 = vmatpush1.bf16.msra.mxu0 %v2103_v39  ;;  %1658 = vmatpush3.bf16.msra.mxu1 %v2121_v42 }
 0x339   :  { %1059 = vmatprep.subr.bf16.mxu0 %v1923_v10  ;;  %1663 = vmatprep.subr.bf16.mxu1 %v2566_v45 }
 0x3db   :  { %v877_v3 = vpop.f32.mrf.mxu0  ;;  %v918_v54 = vpop.f32.mrf.mxu1 }
 0x3dc   :  { %v924_v17 = vadd.f32 %v877_v3, %v2186_v2  ;;  %v938_v58 = vadd.f32 %v2224_v48, %v918_v54 }
 0x3dd   :  { %v879_v47 = vpop.f32.mrf.mxu0  ;;  %v1641_v41 = vpop.f32.mrf.mxu1 }
 0x3de   :  { %v1456_v52 = vmul.f32 -1.442695, %v924_v17  ;;  %v925_v5 = vadd.f32 %v879_v47, %v2191_v6 }
 0x3df   :  { %v881_v28 = vpop.f32.mrf.mxu0  ;;  %v921_v1 = vpop.f32.mrf.mxu1 }
 0x3e0   :  { %1789 = vpow2.f32 %v1456_v52  ;;  %v1457_v0 = vmul.f32 -1.442695, %v925_v5 }
 0x3e1   :  { %v882_v44 = vpop.f32.mrf.mxu0  ;;  %v1642_v60 = vpop.f32.mrf.mxu1 }
 0x3e2   :  { %1791 = vpow2.f32 %v1457_v0 }
 0x3ed   :  { %v1790_v53 = vpop.eup %1789 }
 0x3ee   :  { %v932_v9 = vadd.f32 1.0, %v1790_v53 }
 0x3ef   :  { %v1792_v21 = vpop.eup %1791 }
 0x3f0   :  { %1793 = vrcp.f32 %v932_v9  ;;  %v933_v30 = vadd.f32 1.0, %v1792_v21 }
 0x3f2   :  { %1795 = vrcp.f32 %v933_v30 }
 0x3fd   :  { %v1794_v2 = vpop.eup %1793 }
 0x3fe   :  { %v939_v49 = vmul.f32 %v1794_v2, %v938_v58 }
 0x3ff   :  { %v1796_v63 = vpop.eup %1795 }
 0x400   :  { %v940_v59 = vadd.f32 %v939_v49, %v2184_v62  ;;  %v942_v55 = vsub.f32 1.0, %v1796_v63  ;;  %v944_v6 = vmul.f32 %v1796_v63, %v2316_v33  ;;  %v2411_v63 = vld [vmem:[%s2552_s2 + $0xa8] ss:$12 sps:$4 sm:$0xff]  }
 0x402   :  { %1797 = vtanh.f32 %v940_v59 }
 0x40f   :  { %v1798_v46 = vpop.eup %1797 }
 0x410   :  { %v943_v51 = vmul.f32 %v1798_v46, %v942_v55 }
 0x412   :  { %v2360_v61 = vadd.f32 %v944_v6, %v943_v51 }
 0x414   :  { %v950_v4 = vpack.c.bf16 %v2360_v61, %v2360_v61 }
 0x416   :  { %984 = vmatmul.mubr.bf16.vlgmr.msra.gmra.mxu0 %v950_v4  ;;  %1660 = vmatmul.mubr.bf16.vlgmr.msra.gmra.mxu1 %v950_v4 }
 0x417   :  { %1060 = vmatpush1.bf16.msra.mxu0 %v1928_v11  ;;  %1664 = vmatpush3.bf16.msra.mxu1 %v1976_v19 }
 0x418   :  { %1061 = vmatprep.subr.bf16.mxu0 %v1936_v13  ;;  %1665 = vmatprep.subr.bf16.mxu1 %v2566_v45 }
 0x419   :  { %1091 = vmatprep.mubr.bf16.mxu0 %v2567_v57  ;;  %1679 = vmatprep.mubr.msk.bf16.mxu1 %vm1860_vm2, %v2566_v45 }
 0x41b   :  { %1062 = vmatpush1.bf16.msra.mxu0 %v1950_v15  ;;  %1666 = vmatpush3.bf16.msra.mxu1 %v1991_v22 }
 0x41c   :  { %1063 = vmatprep.subr.bf16.mxu0 %v1956_v16  ;;  %1667 = vmatprep.subr.bf16.mxu1 %v2566_v45 }
 0x41f   :  { %1064 = vmatpush1.bf16.msra.mxu0 %v1971_v18  ;;  %1668 = vmatpush3.bf16.msra.mxu1 %v2016_v26 }
 0x420   :  { %1065 = vmatprep.subr.bf16.mxu0 %v1982_v20  ;;  %1669 = vmatprep.subr.bf16.mxu1 %v2566_v45 }
 0x423   :  { %1066 = vmatpush1.bf16.msra.mxu0 %v1997_v23  ;;  %1670 = vmatpush3.bf16.msra.mxu1 %v2045_v31 }
 0x424   :  { %1067 = vmatprep.subr.bf16.mxu0 %v2009_v25  ;;  %1671 = vmatprep.subr.bf16.mxu1 %v2566_v45 }
 0x427   :  { %1068 = vmatpush1.bf16.msra.mxu0 %v2026_v27  ;;  %1672 = vmatpush3.bf16.msra.mxu1 %v2071_v35 }
 0x428   :  { %1069 = vmatprep.subr.bf16.mxu0 %v2035_v29  ;;  %1673 = vmatprep.subr.bf16.mxu1 %v2566_v45 }
 0x42b   :  { %1070 = vmatpush1.bf16.msra.mxu0 %v2055_v32  ;;  %1674 = vmatpush3.bf16.msra.mxu1 %v2094_v38 }
 0x42c   :  { %1071 = vmatprep.subr.bf16.mxu0 %v2064_v34  ;;  %1675 = vmatprep.subr.bf16.mxu1 %v2566_v45 }
 0x42f   :  { %1072 = vmatpush1.bf16.msra.mxu0 %v2082_v36  ;;  %1676 = vmatpush3.bf16.msra.mxu1 %v2110_v40 }
 0x430   :  { %1073 = vmatprep.subr.bf16.mxu0 %v2088_v37  ;;  %1677 = vmatprep.subr.bf16.mxu1 %v2566_v45 }
 0x433   :  { %1074 = vmatpush1.bf16.msra.mxu0 %v2103_v39  ;;  %1678 = vmatpush3.bf16.msra.mxu1 %v2121_v42 }
 0x434   :  { %1167 = vmatprep.subr.bf16.mxu0 %v1923_v10  ;;  %1683 = vmatprep.subr.bf16.mxu1 %v2566_v45 }
 0x4d6   :  { %v985_v11 = vpop.f32.mrf.mxu0  ;;  %v1026_v13 = vpop.f32.mrf.mxu1 }
 0x4d7   :  { %v1032_v62 = vadd.f32 %v985_v11, %v2196_v12  ;;  %v1046_v0 = vadd.f32 %v2224_v48, %v1026_v13 }
 0x4d8   :  { %v987_v33 = vpop.f32.mrf.mxu0  ;;  %v1661_v3 = vpop.f32.mrf.mxu1 }
 0x4d9   :  { %v1458_v54 = vmul.f32 -1.442695, %v1032_v62  ;;  %v1033_v28 = vadd.f32 %v987_v33, %v2201_v24  ;;  %v1843_v33 = vld [vmem:[%s2552_s2 + $0x90] ss:$12 sps:$4 sm:$0xff]   ;;  %v1844_v3 = vld [vmem:[%s2552_s2 + $0x98] ss:$12 sps:$4 sm:$0xff]  }
 0x4da   :  { %v989_v17 = vpop.f32.mrf.mxu0  ;;  %v1029_v47 = vpop.f32.mrf.mxu1 }
 0x4db   :  { %1799 = vpow2.f32 %v1458_v54  ;;  %v1459_v1 = vmul.f32 -1.442695, %v1033_v28  ;;  %v1845_v54 = vld [vmem:[%s2552_s2 + $0x7c] ss:$12 sps:$4 sm:$0xff]   ;;  %v1847_v17 = vld [vmem:[%s2552_s2 + $0x80] ss:$12 sps:$4 sm:$0xff]  }
 0x4dc   :  { %v990_v41 = vpop.f32.mrf.mxu0  ;;  %v1662_v52 = vpop.f32.mrf.mxu1  ;;  %v1848_v47 = vld [vmem:[%s2552_s2 + $0x64] ss:$12 sps:$4 sm:$0xff]   ;;  %v1851_v28 = vld [vmem:[%s2552_s2 + $0x4c] ss:$12 sps:$4 sm:$0xff]  }
 0x4dd   :  { %1801 = vpow2.f32 %v1459_v1  ;;  %v1849_v41 = vld [vmem:[%s2552_s2 + $0x60] ss:$12 sps:$4 sm:$0xff]   ;;  %v1850_v52 = vld [vmem:[%s2552_s2 + $0x68] ss:$12 sps:$4 sm:$0xff]  }
 0x4de   :  { %v1852_v1 = vld [vmem:[%s2552_s2 + $0x48] ss:$12 sps:$4 sm:$0xff]  }
 0x4e8   :  { %v1800_v44 = vpop.eup %1799 }
 0x4e9   :  { %v1040_v10 = vadd.f32 1.0, %v1800_v44  ;;  %v1853_v44 = vld [vmem:[%s2552_s2 + $0x50] ss:$12 sps:$4 sm:$0xff]  }
 0x4ea   :  { %v1802_v60 = vpop.eup %1801 }
 0x4eb   :  { %1803 = vrcp.f32 %v1040_v10  ;;  %v1041_v5 = vadd.f32 1.0, %v1802_v60  ;;  %v1854_v10 = vld [vmem:[%s2552_s2 + $0x34] ss:$12 sps:$4 sm:$0xff]   ;;  %v1855_v60 = vld [vmem:[%s2552_s2 + $0x30] ss:$12 sps:$4 sm:$0xff]  }
 0x4ed   :  { %1805 = vrcp.f32 %v1041_v5  ;;  %v1856_v5 = vld [vmem:[%s2552_s2 + $0x1c] ss:$12 sps:$4 sm:$0xff]  }
 0x4f8   :  { %v1804_v12 = vpop.eup %1803 }
 0x4f9   :  { %v1047_v53 = vmul.f32 %v1804_v12, %v1046_v0  ;;  %v1857_v0 = vld [vmem:[%s2552_s2 + $0x18] ss:$12 sps:$4 sm:$0xff]  }
 0x4fa   :  { %v1806_v21 = vpop.eup %1805  ;;  %v1858_v12 = vld [vmem:[%s2552_s2 + $0x4] ss:$12 sps:$4 sm:$0xff]  }
 0x4fb   :  { %v1048_v9 = vadd.f32 %v1047_v53, %v2199_v14  ;;  %v1050_v30 = vsub.f32 1.0, %v1806_v21  ;;  %v1052_v24 = vmul.f32 %v1806_v21, %v2360_v61  ;;  %v2418_v14 = vld [vmem:[%s2552_s2 + $0x94] ss:$12 sps:$4 sm:$0xff]  }
 0x4fd   :  { %1807 = vtanh.f32 %v1048_v9 }
 0x50a   :  { %v1808_v58 = vpop.eup %1807 }
 0x50b   :  { %v1051_v2 = vmul.f32 %v1808_v58, %v1050_v30 }
 0x50d   :  { %v2404_v49 = vadd.f32 %v1052_v24, %v1051_v2 }
 0x50f   :  { %v1058_v59 = vpack.c.bf16 %v2404_v49, %v2404_v49 }
 0x511   :  { %1092 = vmatmul.mubr.bf16.vlgmr.msra.gmra.mxu0 %v1058_v59  ;;  %1680 = vmatmul.mubr.bf16.vlgmr.msra.gmra.mxu1 %v1058_v59  ;;  %v2568_v59 = vld [vmem:[#allocation7_spill] sm:$0xff] }
 0x512   :  { %1168 = vmatpush1.bf16.msra.mxu0 %v2411_v63  ;;  %1684 = vmatpush3.bf16.msra.mxu1 %v1976_v19 }
 0x513   :  { %1169 = vmatprep.subr.bf16.mxu0 %v2418_v14  ;;  %1685 = vmatprep.subr.bf16.mxu1 %v2566_v45 }
 0x514   :  { %1199 = vmatprep.mubr.bf16.mxu0 %v2567_v57  ;;  %1699 = vmatprep.mubr.msk.bf16.mxu1 %vm1860_vm2, %v2566_v45 }
 0x516   :  { %1170 = vmatpush1.bf16.msra.mxu0 %v1950_v15  ;;  %1686 = vmatpush3.bf16.msra.mxu1 %v1991_v22  ;;  %v1841_v15 = vld [vmem:[%s2552_s2 + $0xac] ss:$12 sps:$4 sm:$0xff]  }
 0x517   :  { %1171 = vmatprep.subr.bf16.mxu0 %v1956_v16  ;;  %1687 = vmatprep.subr.bf16.mxu1 %v2566_v45 }
 0x51a   :  { %1172 = vmatpush1.bf16.msra.mxu0 %v1971_v18  ;;  %1688 = vmatpush3.bf16.msra.mxu1 %v2016_v26 }
 0x51b   :  { %1173 = vmatprep.subr.bf16.mxu0 %v1982_v20  ;;  %1689 = vmatprep.subr.bf16.mxu1 %v2566_v45 }
 0x51e   :  { %1174 = vmatpush1.bf16.msra.mxu0 %v1997_v23  ;;  %1690 = vmatpush3.bf16.msra.mxu1 %v2045_v31 }
 0x51f   :  { %1175 = vmatprep.subr.bf16.mxu0 %v2009_v25  ;;  %1691 = vmatprep.subr.bf16.mxu1 %v2566_v45 }
 0x522   :  { %1176 = vmatpush1.bf16.msra.mxu0 %v2026_v27  ;;  %1692 = vmatpush3.bf16.msra.mxu1 %v2071_v35 }
 0x523   :  { %1177 = vmatprep.subr.bf16.mxu0 %v2035_v29  ;;  %1693 = vmatprep.subr.bf16.mxu1 %v2566_v45 }
 0x526   :  { %1178 = vmatpush1.bf16.msra.mxu0 %v2055_v32  ;;  %1694 = vmatpush3.bf16.msra.mxu1 %v2094_v38 }
 0x527   :  { %1179 = vmatprep.subr.bf16.mxu0 %v2064_v34  ;;  %1695 = vmatprep.subr.bf16.mxu1 %v2566_v45 }
 0x52a   :  { %1180 = vmatpush1.bf16.msra.mxu0 %v2082_v36  ;;  %1696 = vmatpush3.bf16.msra.mxu1 %v2110_v40 }
 0x52b   :  { %1181 = vmatprep.subr.bf16.mxu0 %v2088_v37  ;;  %1697 = vmatprep.subr.bf16.mxu1 %v2566_v45 }
 0x52e   :  { %1182 = vmatpush1.bf16.msra.mxu0 %v2103_v39  ;;  %1698 = vmatpush3.bf16.msra.mxu1 %v2121_v42 }
 0x52f   :  { %1275 = vmatprep.subr.bf16.mxu0 %v1841_v15  ;;  %1703 = vmatprep.subr.bf16.mxu1 %v2566_v45 }
 0x5d1   :  { %v1093_v16 = vpop.f32.mrf.mxu0  ;;  %v1134_v18 = vpop.f32.mrf.mxu1 }
 0x5d2   :  { %v1140_v19 = vadd.f32 %v1093_v16, %v2206_v43  ;;  %v1154_v55 = vadd.f32 %v2224_v48, %v1134_v18 }
 0x5d3   :  { %v1095_v20 = vpop.f32.mrf.mxu0  ;;  %v1681_v22 = vpop.f32.mrf.mxu1 }
 0x5d4   :  { %v1460_v23 = vmul.f32 -1.442695, %v1140_v19  ;;  %v1141_v31 = vadd.f32 %v1095_v20, %v2211_v50  ;;  %v2569_v19 = vld [vmem:[#allocation6_spill] sm:$0xff] }
 0x5d5   :  { %v1097_v25 = vpop.f32.mrf.mxu0  ;;  %v1137_v26 = vpop.f32.mrf.mxu1 }
 0x5d6   :  { %1809 = vpow2.f32 %v1460_v23  ;;  %v1461_v32 = vmul.f32 -1.442695, %v1141_v31 }
 0x5d7   :  { %v1098_v27 = vpop.f32.mrf.mxu0  ;;  %v1682_v29 = vpop.f32.mrf.mxu1 }
 0x5d8   :  { %1811 = vpow2.f32 %v1461_v32  ;;  %v12_v32 = vstv %s2555_s6 }
 0x5d9   :  { %13 = vst [vmem:[#allocation4] sm:$0x1] %v12_v32 }
 0x5e3   :  { %v1810_v34 = vpop.eup %1809 }
 0x5e4   :  { %v1148_v35 = vadd.f32 1.0, %v1810_v34 }
 0x5e5   :  { %v1812_v36 = vpop.eup %1811 }
 0x5e6   :  { %1813 = vrcp.f32 %v1148_v35  ;;  %v1149_v37 = vadd.f32 1.0, %v1812_v36  ;;  %v2570_v36 = vld [vmem:[#allocation8_spill] sm:$0xff] }
 0x5e8   :  { %1815 = vrcp.f32 %v1149_v37 }
 0x5f3   :  { %v1814_v43 = vpop.eup %1813 }
 0x5f4   :  { %v1155_v46 = vmul.f32 %v1814_v43, %v1154_v55 }
 0x5f5   :  { %v1816_v6 = vpop.eup %1815 }
 0x5f6   :  { %v1156_v51 = vadd.f32 %v1155_v46, %v2194_v7  ;;  %v1158_v61 = vsub.f32 1.0, %v1816_v6  ;;  %v1160_v50 = vmul.f32 %v1816_v6, %v2404_v49  ;;  %v1842_v7 = vld [vmem:[%s2552_s2 + $0xb0] ss:$12 sps:$4 sm:$0xff]  }
 0x5f8   :  { %1817 = vtanh.f32 %v1156_v51 }
 0x605   :  { %v1818_v4 = vpop.eup %1817 }
 0x606   :  { %v1159_v11 = vmul.f32 %v1818_v4, %v1158_v61 }
 0x608   :  { %v2460_v13 = vadd.f32 %v1160_v50, %v1159_v11 }
 0x60a   :  { %v1166_v62 = vpack.c.bf16 %v2460_v13, %v2460_v13 }
 0x60c   :  { %1200 = vmatmul.mubr.bf16.vlgmr.msra.gmra.mxu0 %v1166_v62  ;;  %1700 = vmatmul.mubr.bf16.vlgmr.msra.gmra.mxu1 %v1166_v62 }
 0x60d   :  { %1276 = vmatpush1.bf16.msra.mxu0 %v2411_v63  ;;  %1704 = vmatpush3.bf16.msra.mxu1 %v1842_v7 }
 0x60e   :  { %1277 = vmatprep.subr.bf16.mxu0 %v2418_v14  ;;  %1705 = vmatprep.subr.bf16.mxu1 %v2566_v45 }
 0x60f   :  { %1307 = vmatprep.mubr.bf16.mxu0 %v2567_v57  ;;  %1719 = vmatprep.mubr.msk.bf16.mxu1 %vm1860_vm2, %v2566_v45  ;;  %v1846_v57 = vld [vmem:[%s2552_s2 + $0x78] ss:$12 sps:$4 sm:$0xff]  }
 0x611   :  { %1278 = vmatpush1.bf16.msra.mxu0 %v1843_v33  ;;  %1706 = vmatpush3.bf16.msra.mxu1 %v1844_v3 }
 0x612   :  { %1279 = vmatprep.subr.bf16.mxu0 %v1845_v54  ;;  %1707 = vmatprep.subr.bf16.mxu1 %v2566_v45 }
 0x615   :  { %1280 = vmatpush1.bf16.msra.mxu0 %v1846_v57  ;;  %1708 = vmatpush3.bf16.msra.mxu1 %v1847_v17  ;;  %v2571_v17 = vld [vmem:[#allocation5_spill] sm:$0xff] }
 0x616   :  { %1281 = vmatprep.subr.bf16.mxu0 %v1848_v47  ;;  %1709 = vmatprep.subr.bf16.mxu1 %v2566_v45 }
 0x619   :  { %1282 = vmatpush1.bf16.msra.mxu0 %v1849_v41  ;;  %1710 = vmatpush3.bf16.msra.mxu1 %v1850_v52 }
 0x61a   :  { %1283 = vmatprep.subr.bf16.mxu0 %v1851_v28  ;;  %1711 = vmatprep.subr.bf16.mxu1 %v2566_v45 }
 0x61d   :  { %1284 = vmatpush1.bf16.msra.mxu0 %v1852_v1  ;;  %1712 = vmatpush3.bf16.msra.mxu1 %v1853_v44  ;;  %v1466_v44 = vld [vmem:[%s2556_s5] ss:$0 sm:$0xff] }
 0x61e   :  { %1285 = vmatprep.subr.bf16.mxu0 %v1854_v10  ;;  %1713 = vmatprep.subr.bf16.mxu1 %v2566_v45 }
 0x621   :  { %1286 = vmatpush1.bf16.msra.mxu0 %v1855_v60  ;;  %1714 = vmatpush3.bf16.msra.mxu1 %v2094_v38 }
 0x622   :  { %1287 = vmatprep.subr.bf16.mxu0 %v1856_v5  ;;  %1715 = vmatprep.subr.bf16.mxu1 %v2566_v45  ;;  %v1467_v5 = vld [vmem:[#allocation4] ss:$0 sm:$0xff] }
 0x625   :  { %1288 = vmatpush1.bf16.msra.mxu0 %v1857_v0  ;;  %1716 = vmatpush3.bf16.msra.mxu1 %v2110_v40 }
 0x626   :  { %1289 = vmatprep.subr.bf16.mxu0 %v1858_v12  ;;  %1717 = vmatprep.subr.bf16.mxu1 %v2566_v45 }
 0x629   :  { %1290 = vmatpush1.bf16.msra.mxu0 %v2103_v39  ;;  %1718 = vmatpush3.bf16.msra.mxu1 %v2121_v42 }
 0x6cc   :  { %v1201_v38 = vpop.f32.mrf.mxu0  ;;  %v1242_v53 = vpop.f32.mrf.mxu1 }
 0x6cd   :  { %v1248_v9 = vadd.f32 %v1201_v38, %v2213_v56  ;;  %v1262_v16 = vadd.f32 %v2224_v48, %v1242_v53 }
 0x6ce   :  { %v1203_v21 = vpop.f32.mrf.mxu0  ;;  %v1701_v30 = vpop.f32.mrf.mxu1 }
 0x6cf   :  { %v1462_v58 = vmul.f32 -1.442695, %v1248_v9  ;;  %v1249_v63 = vadd.f32 %v1203_v21, %v2568_v59 }
 0x6d0   :  { %v1205_v2 = vpop.f32.mrf.mxu0  ;;  %v1245_v40 = vpop.f32.mrf.mxu1 }
 0x6d1   :  { %1819 = vpow2.f32 %v1462_v58  ;;  %v1463_v14 = vmul.f32 -1.442695, %v1249_v63 }
 0x6d2   :  { %v1206_v24 = vpop.f32.mrf.mxu0  ;;  %v1702_v49 = vpop.f32.mrf.mxu1 }
 0x6d3   :  { %1821 = vpow2.f32 %v1463_v14 }
 0x6de   :  { %v1820_v45 = vpop.eup %1819 }
 0x6df   :  { %v1256_v39 = vadd.f32 1.0, %v1820_v45 }
 0x6e0   :  { %v1822_v42 = vpop.eup %1821 }
 0x6e1   :  { %1823 = vrcp.f32 %v1256_v39  ;;  %v1257_v15 = vadd.f32 1.0, %v1822_v42 }
 0x6e3   :  { %1825 = vrcp.f32 %v1257_v15 }
 0x6ee   :  { %v1824_v56 = vpop.eup %1823 }
 0x6ef   :  { %v1263_v18 = vmul.f32 %v1824_v56, %v1262_v16 }
 0x6f0   :  { %v1826_v22 = vpop.eup %1825 }
 0x6f1   :  { %v1264_v20 = vadd.f32 %v1263_v18, %v2569_v19  ;;  %v1266_v23 = vsub.f32 1.0, %v1826_v22  ;;  %v1268_v27 = vmul.f32 %v1826_v22, %v2460_v13 }
 0x6f3   :  { %1827 = vtanh.f32 %v1264_v20 }
 0x700   :  { %v1828_v25 = vpop.eup %1827 }
 0x701   :  { %v1267_v26 = vmul.f32 %v1828_v25, %v1266_v23 }
 0x703   :  { %v1269_v29 = vadd.f32 %v1268_v27, %v1267_v26 }
 0x705   :  { %v1274_v31 = vpack.c.bf16 %v1269_v29, %v1269_v29 }
 0x707   :  { %1308 = vmatmul.mubr.bf16.vlgmr.msra.gmra.mxu0 %v1274_v31  ;;  %1720 = vmatmul.mubr.bf16.vlgmr.msra.gmra.mxu1 %v1274_v31 }
 0x7c7   :  { %v1309_v34 = vpop.f32.mrf.mxu0  ;;  %v1350_v35 = vpop.f32.mrf.mxu1 }
 0x7c8   :  { %v1356_v37 = vadd.f32 %v1309_v34, %v2570_v36  ;;  %v1370_v3 = vadd.f32 %v2224_v48, %v1350_v35 }
 0x7c9   :  { %v1311_v55 = vpop.f32.mrf.mxu0  ;;  %v1721_v43 = vpop.f32.mrf.mxu1 }
 0x7ca   :  { %v1464_v46 = vmul.f32 -1.442695, %v1356_v37  ;;  %v1357_v11 = vadd.f32 %v1311_v55, %v2219_v8 }
 0x7cb   :  { %v1313_v51 = vpop.f32.mrf.mxu0  ;;  %v1353_v6 = vpop.f32.mrf.mxu1 }
 0x7cc   :  { %1829 = vpow2.f32 %v1464_v46  ;;  %v1465_v50 = vmul.f32 -1.442695, %v1357_v11 }
 0x7cd   :  { %v1314_v61 = vpop.f32.mrf.mxu0  ;;  %v1722_v4 = vpop.f32.mrf.mxu1 }
 0x7ce   :  { %1831 = vpow2.f32 %v1465_v50 }
 0x7d9   :  { %v1830_v13 = vpop.eup %1829 }
 0x7da   :  { %v1364_v62 = vadd.f32 1.0, %v1830_v13 }
 0x7db   :  { %v1832_v7 = vpop.eup %1831 }
 0x7dc   :  { %1833 = vrcp.f32 %v1364_v62  ;;  %v1365_v33 = vadd.f32 1.0, %v1832_v7 }
 0x7de   :  { %1835 = vrcp.f32 %v1365_v33 }
 0x7e9   :  { %v1834_v54 = vpop.eup %1833 }
 0x7ea   :  { %v1371_v57 = vmul.f32 %v1834_v54, %v1370_v3 }
 0x7eb   :  { %v1836_v41 = vpop.eup %1835 }
 0x7ec   :  { %v1372_v47 = vadd.f32 %v1371_v57, %v2571_v17  ;;  %v1374_v52 = vsub.f32 1.0, %v1836_v41  ;;  %v1376_v8 = vmul.f32 %v1836_v41, %v1269_v29 }
 0x7ee   :  { %1837 = vtanh.f32 %v1372_v47 }
 0x7fb   :  { %v1838_v28 = vpop.eup %1837 }
 0x7fc   :  { %v1375_v1 = vmul.f32 %v1838_v28, %v1374_v52 }
 0x7fe   :  { %v1377_v10 = vadd.f32 %v1376_v8, %v1375_v1 }
 0x800   :  { %v1390_v60 = vmul.f32 %v1466_v44, %v1377_v10 }
 0x802   :  { %1391 = vadd.xlane.f32.xlu0 %v1390_v60 }
 0x88b   :  { %v1392_v48 = vpop.xlane.xlu0 %1391 }
 0x88c   :  { %v1400_v0 = vadd.f32 %v1467_v5, %v1392_v48 }
 0x88e   :  { %1401 = vst.msk [vmem:[%s2557_s7] sm:$0xff] %vm73_vm0, %v1400_v0 }

</bundles_post_ra>
